<compile_context>
chip_gen: v5e
topology: v5e:2x2
jax: 0.10.0
libtpu: 0.0.40
codegen_flags: <defaults>
</compile_context>

<pallas_src>
import jax
import jax.numpy as jnp
from jax.experimental import pallas as pl
from jax.experimental.pallas import tpu as pltpu

NEG_SLOPE = 0.01   # F.leaky_relu default negative_slope
KS_TERMS = 8       # terms of the Kolmogorov survival-function series
LANE = 128         # in-kernel batch chunk width (one vreg of lanes)


def _round_up(x, m):
    return ((x + m - 1) // m) * m


def _kstest_fc_kernel(xw_ref, yw_ref, w_ref, b_ref, o_ref):
    # xw_ref: (n, K, Bt)  recent windows   data[t:t+w, cmdb_idx]   (KPI=sublane, batch=lane)
    # yw_ref: (m, K, Bt)  reference windows data[t-w:t+w, cmdb_idx]
    # w_ref : (C, K)      fc1 weight (nn.Linear layout, K zero-padded to mult. of 8)
    # b_ref : (C, 1)      fc1 bias
    # o_ref : (C, Bt)     leaky_relu(fc1(p_values)) -- lane-dense store
    n, kdim, bt = xw_ref.shape
    m = yw_ref.shape[0]
    assert bt % LANE == 0

    w = w_ref[...]                       # (C, K) tiny; loaded once per grid step
    b = b_ref[...]                       # (C, 1)

    f_n = jnp.float32(n)
    f_m = jnp.float32(m)
    inv_nm = jnp.float32(1.0 / (n * m))
    en = jnp.float32(n * m) / jnp.float32(n + m)

    # Process the batch tile LANE lanes at a time. Each intermediate below is a
    # single (kdim, LANE) block (1 vreg at kdim=8), so the live set is ~12
    # sample vregs + a few accumulators -- no spills regardless of tile size.
    @pl.loop(0, bt // LANE)
    def _(c):
        off = pl.multiple_of(c * LANE, LANE)
        sl = pl.ds(off, LANE)

        xs = [xw_ref[s, :, sl] for s in range(n)]      # n x (kdim, LANE)
        ys = [yw_ref[s, :, sl] for s in range(m)]      # m x (kdim, LANE)

        # KS statistic via integer-valued ECDF counts with deferred scaling:
        #   acc(e) = sum_s m*[x_s <= e] - sum_s n*[y_s <= e] = n*m*(Fx(e)-Fy(e))
        #   D = max_e |acc(e)| / (n*m), sup over all n+m sample points.
        # Straight-line unroll (12 evals x 12 samples); carries are one vreg.
        smax = jnp.zeros((kdim, LANE), jnp.float32)
        for ev in xs + ys:
            acc = jnp.zeros((kdim, LANE), jnp.float32)
            for xv in xs:
                acc = acc + jnp.where(xv <= ev, f_m, 0.0)
            for yv in ys:
                acc = acc - jnp.where(yv <= ev, f_n, 0.0)
            smax = jnp.maximum(smax, jnp.abs(acc))

        d = smax * inv_nm                               # (kdim, LANE)
        zz = en * d * d

        # Two-sided p-value via the asymptotic Kolmogorov distribution:
        #   p = 2 * sum_{k>=1} (-1)^{k-1} exp(-2 k^2 zz)
        # computed from a single EUP exp: q = exp(-2*zz); q^{k^2} built with
        # VPU power products using q^{(k+1)^2} = q^{k^2} * q^{2k+1}.
        # TODO(synk): scipy.stats.ks_2samp uses the exact small-sample two-sample
        # distribution for these tiny n/m; the classical asymptotic series is
        # used here instead.
        q = jnp.exp(jnp.float32(-2.0) * zz)
        q2 = q * q
        t = q                      # q^{k^2}
        odd = q2 * q               # q^{2k+1}
        p = q
        for k in range(2, KS_TERMS + 1):
            t = t * odd
            odd = odd * q2
            p = p - t if (k % 2 == 0) else p + t
        p = 2.0 * p
        # Keep clip + d<=0 guard: the alternating series oscillates for small z.
        p = jnp.where(d <= 0.0, jnp.float32(1.0), jnp.clip(p, 0.0, 1.0))

        # fc1 + leaky_relu. (C,K)x(K,LANE) is far below MXU granularity, so do a
        # VPU broadcast-multiply + sublane(K) reduce (lands on the XLU slot).
        y = jnp.sum(w[:, :, None] * p[None, :, :], axis=1) + b     # (C, LANE)
        o_ref[:, sl] = jnp.where(y >= 0.0, y, jnp.float32(NEG_SLOPE) * y)


def kstest_pallas(xw, yw, w, bias, *, b_tile=2048):
    """Batched KStest forward.

    xw  : (B, window,   kpi_num)  recent windows   data[t:t+w, cmdb_idx]
    yw  : (B, 2*window, kpi_num)  reference windows data[t-w:t+w, cmdb_idx]
    w   : (class_num, kpi_num)    fc1 weight
    bias: (class_num,)            fc1 bias
    Returns (B, class_num) = leaky_relu(fc1(ks_2samp p-values)).
    """
    B, n, K = xw.shape
    m = yw.shape[1]
    C = w.shape[0]

    # KPI axis -> sublanes (padded to a multiple of 8); batch -> lanes.
    # Padded KPI rows are all-zero => D=0 => p=1, and their fc1 weight columns
    # are zero, so they contribute nothing; padded lanes are sliced off after.
    k_pad = _round_up(K, 8)

    # Batch tiling: make the grid tile as large as allowed (amortizes the
    # ~600-cycle per-grid-step overhead; vreg pressure is handled by the
    # in-kernel lane chunking), but keep >= 2 grid steps whenever B allows it
    # so dimension_semantics=("parallel",) can use both v7x TensorCores.
    b_chunks = _round_up(B, LANE) // LANE
    tile_chunks = max(1, min(b_tile // LANE, b_chunks))
    if b_chunks >= 2:
        tile_chunks = min(tile_chunks, -(-b_chunks // 2))   # ceil(b_chunks/2)
    bt = tile_chunks * LANE
    grid = -(-b_chunks // tile_chunks)
    b_pad = grid * bt

    # TODO(synk): for very large B this wrapper-side gather/transpose/pad
    # roughly doubles input HBM traffic; it could be fused into the kernel via
    # scalar-prefetched (t, cmdb_idx) + a resident data table, but is kept on
    # the XLA side for simplicity.
    xw_p = jnp.zeros((n, k_pad, b_pad), jnp.float32).at[:, :K, :B].set(
        jnp.transpose(xw.astype(jnp.float32), (1, 2, 0)))
    yw_p = jnp.zeros((m, k_pad, b_pad), jnp.float32).at[:, :K, :B].set(
        jnp.transpose(yw.astype(jnp.float32), (1, 2, 0)))
    w_p = jnp.zeros((C, k_pad), jnp.float32).at[:, :K].set(w.astype(jnp.float32))
    b_col = bias.astype(jnp.float32).reshape(C, 1)

    out = pl.pallas_call(
        _kstest_fc_kernel,
        out_shape=jax.ShapeDtypeStruct((C, b_pad), jnp.float32),
        grid_spec=pltpu.PrefetchScalarGridSpec(
            num_scalar_prefetch=0,
            grid=(grid,),
            in_specs=[
                pl.BlockSpec((n, k_pad, bt), lambda i: (0, 0, i)),
                pl.BlockSpec((m, k_pad, bt), lambda i: (0, 0, i)),
                pl.BlockSpec((C, k_pad), lambda i: (0, 0)),   # grid-invariant
                pl.BlockSpec((C, 1), lambda i: (0, 0)),       # grid-invariant
            ],
            out_specs=pl.BlockSpec((C, bt), lambda i: (0, i)),
        ),
        compiler_params=pltpu.CompilerParams(
            dimension_semantics=("parallel",)),   # batch tiles shard across v7x's 2 TCs
    )(xw_p, yw_p, w_p, b_col)

    return out[:, :B].T                           # (B, class_num)


def _reference(xw, yw, w, bias):
    """Pure-JAX reference (batched asymptotic KS p-values, direct exp series)."""
    xw = xw.astype(jnp.float32)
    yw = yw.astype(jnp.float32)
    n, m = xw.shape[1], yw.shape[1]
    allv = jnp.concatenate([xw, yw], axis=1)                       # (B, E, K)
    fx = jnp.mean((xw[:, None, :, :] <= allv[:, :, None, :]).astype(jnp.float32), axis=2)
    fy = jnp.mean((yw[:, None, :, :] <= allv[:, :, None, :]).astype(jnp.float32), axis=2)
    d = jnp.max(jnp.abs(fx - fy), axis=1)                          # (B, K)
    en = jnp.float32(n * m) / jnp.float32(n + m)
    zz = en * d * d
    ks = jnp.arange(1, KS_TERMS + 1, dtype=jnp.float32)
    sign = jnp.where(ks % 2 == 1, 1.0, -1.0)
    p = 2.0 * jnp.sum(sign[None, None, :]
                      * jnp.exp(-2.0 * (ks[None, None, :] ** 2) * zz[:, :, None]), axis=-1)
    p = jnp.where(d <= 0.0, 1.0, jnp.clip(p, 0.0, 1.0))            # (B, K)
    y = jnp.sum(p[:, :, None] * w.T[None, :, :], axis=1) + bias[None, :]
    return jnp.where(y >= 0.0, y, NEG_SLOPE * y)


if __name__ == "__main__":
    # Small, deterministic setup consistent with Basic/KStest.__init__.
    T, metric_num = 64, 16
    kpi_num, class_num, window = 8, 4, 4
    B = 256                                   # batch of (cmdb_id, timestamp) queries

    key = jax.random.PRNGKey(0)
    k_data, k_w, k_b, k_t, k_c = jax.random.split(key, 5)

    # Basic.__init__: nan_to_num + F.pad(..., (0, 1)) -> extra zero-pad column.
    data = jax.random.normal(k_data, (T, metric_num), dtype=jnp.float32)
    data = jnp.pad(data, ((0, 0), (0, 1)))

    # Two cmdb_ids; cmdb 0 is missing its last kpi -> maps to the zero-pad column.
    cmdb_idx_table = jnp.array(
        [list(range(kpi_num - 1)) + [metric_num],
         list(range(kpi_num, 2 * kpi_num))], dtype=jnp.int32)      # (2, kpi_num)

    # Batch of queries (cmdb_id, timestamp).
    timestamps = jax.random.uniform(k_t, (B,), jnp.float32,
                                    minval=float(window), maxval=float(T - window - 1))
    cmdb_ids = jax.random.randint(k_c, (B,), 0, 2)

    # forward(...) glue: get_kpi_at_time window slicing + column gather, batched.
    t = jnp.floor(timestamps + 0.5).astype(jnp.int32)              # int(t + 0.5)
    cols = cmdb_idx_table[cmdb_ids]                                # (B, kpi_num)
    x_rows = t[:, None] + jnp.arange(window)[None, :]              # (B, window)
    y_rows = (t - window)[:, None] + jnp.arange(2 * window)[None, :]
    xw = data[x_rows[:, :, None], cols[:, None, :]]                # (B, window, kpi_num)
    yw = data[y_rows[:, :, None], cols[:, None, :]]                # (B, 2*window, kpi_num)

    # fc1 = nn.Linear(kpi_num, class_num), deterministic init.
    bound = 1.0 / (kpi_num ** 0.5)
    w = jax.random.uniform(k_w, (class_num, kpi_num), jnp.float32, -bound, bound)
    bias = jax.random.uniform(k_b, (class_num,), jnp.float32, -bound, bound)

    out = kstest_pallas(xw, yw, w, bias)
    out = jax.block_until_ready(out)

    ref = _reference(xw, yw, w, bias)
    assert out.shape == (B, class_num)
    assert jnp.allclose(out, ref, rtol=1e-4, atol=1e-4), (out, ref)

    print("KERNEL_OK")
</pallas_src>

<mosaic_0001>
module attributes {stable_mosaic.version = 11 : i64} {
  func.func @_kstest_fc_kernel(%arg0: i32, %arg1: memref<4x8x128xf32, #tpu.memory_space<vmem>>, %arg2: memref<8x8x128xf32, #tpu.memory_space<vmem>>, %arg3: memref<4x8xf32, #tpu.memory_space<vmem>>, %arg4: memref<4x1xf32, #tpu.memory_space<vmem>>, %arg5: memref<4x128xf32, #tpu.memory_space<vmem>>) attributes {dimension_semantics = [#tpu.dimension_semantics<parallel>], iteration_bounds = array<i64: 2>, scalar_prefetch = 0 : i64, scratch_operands = 0 : i64, tpu.core_type = #tpu.core_type<tc>, window_params = [{transform_indices = @transform_0, window_bounds = array<i64: 4, 8, 128>}, {transform_indices = @transform_1, window_bounds = array<i64: 8, 8, 128>}, {pipeline_mode = #tpu.pipeline_mode<synchronous>, transform_indices = @transform_2, window_bounds = array<i64: 4, 8>}, {pipeline_mode = #tpu.pipeline_mode<synchronous>, transform_indices = @transform_3, window_bounds = array<i64: 4, 1>}, {transform_indices = @transform_4, window_bounds = array<i64: 4, 128>}]} {
    %c0 = arith.constant 0 : index
    %c0_0 = arith.constant 0 : index
    %0 = vector.load %arg3[%c0, %c0_0] : memref<4x8xf32, #tpu.memory_space<vmem>>, vector<4x8xf32>
    %c0_1 = arith.constant 0 : index
    %c0_2 = arith.constant 0 : index
    %1 = vector.load %arg4[%c0_1, %c0_2] : memref<4x1xf32, #tpu.memory_space<vmem>>, vector<4x1xf32>
    %cst = arith.constant 3.200000e+01 : f32
    %cst_3 = arith.constant 1.200000e+01 : f32
    %2 = arith.divf %cst, %cst_3 : f32
    %cst_4 = arith.constant 8.000000e+00 : f32
    %cst_5 = arith.constant 4.000000e+00 : f32
    %cst_6 = arith.constant 3.125000e-02 : f32
    %c0_i32 = arith.constant 0 : i32
    %c1_i32 = arith.constant 1 : i32
    %3 = arith.muli %c0_i32, %c1_i32 : i32
    %c0_i32_7 = arith.constant 0 : i32
    %4 = arith.addi %c0_i32_7, %3 : i32
    %c128_i32 = arith.constant 128 : i32
    %5 = arith.muli %4, %c128_i32 : i32
    %6 = tpu.assume_multiple %5, 128 : i32
    %c0_8 = arith.constant 0 : index
    %c0_9 = arith.constant 0 : index
    %7 = arith.index_cast %6 : i32 to index
    %8 = vector.load %arg1[%c0_8, %c0_9, %7] : memref<4x8x128xf32, #tpu.memory_space<vmem>>, vector<1x8x128xf32>
    %9 = vector.shape_cast %8 : vector<1x8x128xf32> to vector<8x128xf32>
    %c1 = arith.constant 1 : index
    %c0_10 = arith.constant 0 : index
    %10 = arith.index_cast %6 : i32 to index
    %11 = vector.load %arg1[%c1, %c0_10, %10] : memref<4x8x128xf32, #tpu.memory_space<vmem>>, vector<1x8x128xf32>
    %12 = vector.shape_cast %11 : vector<1x8x128xf32> to vector<8x128xf32>
    %c2 = arith.constant 2 : index
    %c0_11 = arith.constant 0 : index
    %13 = arith.index_cast %6 : i32 to index
    %14 = vector.load %arg1[%c2, %c0_11, %13] : memref<4x8x128xf32, #tpu.memory_space<vmem>>, vector<1x8x128xf32>
    %15 = vector.shape_cast %14 : vector<1x8x128xf32> to vector<8x128xf32>
    %c3 = arith.constant 3 : index
    %c0_12 = arith.constant 0 : index
    %16 = arith.index_cast %6 : i32 to index
    %17 = vector.load %arg1[%c3, %c0_12, %16] : memref<4x8x128xf32, #tpu.memory_space<vmem>>, vector<1x8x128xf32>
    %18 = vector.shape_cast %17 : vector<1x8x128xf32> to vector<8x128xf32>
    %c0_13 = arith.constant 0 : index
    %c0_14 = arith.constant 0 : index
    %19 = arith.index_cast %6 : i32 to index
    %20 = vector.load %arg2[%c0_13, %c0_14, %19] : memref<8x8x128xf32, #tpu.memory_space<vmem>>, vector<1x8x128xf32>
    %21 = vector.shape_cast %20 : vector<1x8x128xf32> to vector<8x128xf32>
    %c1_15 = arith.constant 1 : index
    %c0_16 = arith.constant 0 : index
    %22 = arith.index_cast %6 : i32 to index
    %23 = vector.load %arg2[%c1_15, %c0_16, %22] : memref<8x8x128xf32, #tpu.memory_space<vmem>>, vector<1x8x128xf32>
    %24 = vector.shape_cast %23 : vector<1x8x128xf32> to vector<8x128xf32>
    %c2_17 = arith.constant 2 : index
    %c0_18 = arith.constant 0 : index
    %25 = arith.index_cast %6 : i32 to index
    %26 = vector.load %arg2[%c2_17, %c0_18, %25] : memref<8x8x128xf32, #tpu.memory_space<vmem>>, vector<1x8x128xf32>
    %27 = vector.shape_cast %26 : vector<1x8x128xf32> to vector<8x128xf32>
    %c3_19 = arith.constant 3 : index
    %c0_20 = arith.constant 0 : index
    %28 = arith.index_cast %6 : i32 to index
    %29 = vector.load %arg2[%c3_19, %c0_20, %28] : memref<8x8x128xf32, #tpu.memory_space<vmem>>, vector<1x8x128xf32>
    %30 = vector.shape_cast %29 : vector<1x8x128xf32> to vector<8x128xf32>
    %c4 = arith.constant 4 : index
    %c0_21 = arith.constant 0 : index
    %31 = arith.index_cast %6 : i32 to index
    %32 = vector.load %arg2[%c4, %c0_21, %31] : memref<8x8x128xf32, #tpu.memory_space<vmem>>, vector<1x8x128xf32>
    %33 = vector.shape_cast %32 : vector<1x8x128xf32> to vector<8x128xf32>
    %c5 = arith.constant 5 : index
    %c0_22 = arith.constant 0 : index
    %34 = arith.index_cast %6 : i32 to index
    %35 = vector.load %arg2[%c5, %c0_22, %34] : memref<8x8x128xf32, #tpu.memory_space<vmem>>, vector<1x8x128xf32>
    %36 = vector.shape_cast %35 : vector<1x8x128xf32> to vector<8x128xf32>
    %c6 = arith.constant 6 : index
    %c0_23 = arith.constant 0 : index
    %37 = arith.index_cast %6 : i32 to index
    %38 = vector.load %arg2[%c6, %c0_23, %37] : memref<8x8x128xf32, #tpu.memory_space<vmem>>, vector<1x8x128xf32>
    %39 = vector.shape_cast %38 : vector<1x8x128xf32> to vector<8x128xf32>
    %c7 = arith.constant 7 : index
    %c0_24 = arith.constant 0 : index
    %40 = arith.index_cast %6 : i32 to index
    %41 = vector.load %arg2[%c7, %c0_24, %40] : memref<8x8x128xf32, #tpu.memory_space<vmem>>, vector<1x8x128xf32>
    %42 = vector.shape_cast %41 : vector<1x8x128xf32> to vector<8x128xf32>
    %cst_25 = arith.constant 0.000000e+00 : f32
    %43 = vector.broadcast %cst_25 : f32 to vector<8x128xf32>
    %cst_26 = arith.constant 0.000000e+00 : f32
    %44 = vector.broadcast %cst_26 : f32 to vector<8x128xf32>
    %45 = arith.cmpf ole, %9, %9 : vector<8x128xf32>
    %cst_27 = arith.constant 0.000000e+00 : f32
    %46 = vector.broadcast %cst_4 : f32 to vector<8x128xf32>
    %47 = vector.broadcast %cst_27 : f32 to vector<8x128xf32>
    %48 = arith.select %45, %46, %47 : vector<8x128xi1>, vector<8x128xf32>
    %49 = arith.addf %44, %48 : vector<8x128xf32>
    %50 = arith.cmpf ole, %12, %9 : vector<8x128xf32>
    %cst_28 = arith.constant 0.000000e+00 : f32
    %51 = vector.broadcast %cst_4 : f32 to vector<8x128xf32>
    %52 = vector.broadcast %cst_28 : f32 to vector<8x128xf32>
    %53 = arith.select %50, %51, %52 : vector<8x128xi1>, vector<8x128xf32>
    %54 = arith.addf %49, %53 : vector<8x128xf32>
    %55 = arith.cmpf ole, %15, %9 : vector<8x128xf32>
    %cst_29 = arith.constant 0.000000e+00 : f32
    %56 = vector.broadcast %cst_4 : f32 to vector<8x128xf32>
    %57 = vector.broadcast %cst_29 : f32 to vector<8x128xf32>
    %58 = arith.select %55, %56, %57 : vector<8x128xi1>, vector<8x128xf32>
    %59 = arith.addf %54, %58 : vector<8x128xf32>
    %60 = arith.cmpf ole, %18, %9 : vector<8x128xf32>
    %cst_30 = arith.constant 0.000000e+00 : f32
    %61 = vector.broadcast %cst_4 : f32 to vector<8x128xf32>
    %62 = vector.broadcast %cst_30 : f32 to vector<8x128xf32>
    %63 = arith.select %60, %61, %62 : vector<8x128xi1>, vector<8x128xf32>
    %64 = arith.addf %59, %63 : vector<8x128xf32>
    %65 = arith.cmpf ole, %21, %9 : vector<8x128xf32>
    %cst_31 = arith.constant 0.000000e+00 : f32
    %66 = vector.broadcast %cst_5 : f32 to vector<8x128xf32>
    %67 = vector.broadcast %cst_31 : f32 to vector<8x128xf32>
    %68 = arith.select %65, %66, %67 : vector<8x128xi1>, vector<8x128xf32>
    %69 = arith.subf %64, %68 : vector<8x128xf32>
    %70 = arith.cmpf ole, %24, %9 : vector<8x128xf32>
    %cst_32 = arith.constant 0.000000e+00 : f32
    %71 = vector.broadcast %cst_5 : f32 to vector<8x128xf32>
    %72 = vector.broadcast %cst_32 : f32 to vector<8x128xf32>
    %73 = arith.select %70, %71, %72 : vector<8x128xi1>, vector<8x128xf32>
    %74 = arith.subf %69, %73 : vector<8x128xf32>
    %75 = arith.cmpf ole, %27, %9 : vector<8x128xf32>
    %cst_33 = arith.constant 0.000000e+00 : f32
    %76 = vector.broadcast %cst_5 : f32 to vector<8x128xf32>
    %77 = vector.broadcast %cst_33 : f32 to vector<8x128xf32>
    %78 = arith.select %75, %76, %77 : vector<8x128xi1>, vector<8x128xf32>
    %79 = arith.subf %74, %78 : vector<8x128xf32>
    %80 = arith.cmpf ole, %30, %9 : vector<8x128xf32>
    %cst_34 = arith.constant 0.000000e+00 : f32
    %81 = vector.broadcast %cst_5 : f32 to vector<8x128xf32>
    %82 = vector.broadcast %cst_34 : f32 to vector<8x128xf32>
    %83 = arith.select %80, %81, %82 : vector<8x128xi1>, vector<8x128xf32>
    %84 = arith.subf %79, %83 : vector<8x128xf32>
    %85 = arith.cmpf ole, %33, %9 : vector<8x128xf32>
    %cst_35 = arith.constant 0.000000e+00 : f32
    %86 = vector.broadcast %cst_5 : f32 to vector<8x128xf32>
    %87 = vector.broadcast %cst_35 : f32 to vector<8x128xf32>
    %88 = arith.select %85, %86, %87 : vector<8x128xi1>, vector<8x128xf32>
    %89 = arith.subf %84, %88 : vector<8x128xf32>
    %90 = arith.cmpf ole, %36, %9 : vector<8x128xf32>
    %cst_36 = arith.constant 0.000000e+00 : f32
    %91 = vector.broadcast %cst_5 : f32 to vector<8x128xf32>
    %92 = vector.broadcast %cst_36 : f32 to vector<8x128xf32>
    %93 = arith.select %90, %91, %92 : vector<8x128xi1>, vector<8x128xf32>
    %94 = arith.subf %89, %93 : vector<8x128xf32>
    %95 = arith.cmpf ole, %39, %9 : vector<8x128xf32>
    %cst_37 = arith.constant 0.000000e+00 : f32
    %96 = vector.broadcast %cst_5 : f32 to vector<8x128xf32>
    %97 = vector.broadcast %cst_37 : f32 to vector<8x128xf32>
    %98 = arith.select %95, %96, %97 : vector<8x128xi1>, vector<8x128xf32>
    %99 = arith.subf %94, %98 : vector<8x128xf32>
    %100 = arith.cmpf ole, %42, %9 : vector<8x128xf32>
    %cst_38 = arith.constant 0.000000e+00 : f32
    %101 = vector.broadcast %cst_5 : f32 to vector<8x128xf32>
    %102 = vector.broadcast %cst_38 : f32 to vector<8x128xf32>
    %103 = arith.select %100, %101, %102 : vector<8x128xi1>, vector<8x128xf32>
    %104 = arith.subf %99, %103 : vector<8x128xf32>
    %105 = math.absf %104 : vector<8x128xf32>
    %106 = arith.maximumf %43, %105 : vector<8x128xf32>
    %cst_39 = arith.constant 0.000000e+00 : f32
    %107 = vector.broadcast %cst_39 : f32 to vector<8x128xf32>
    %108 = arith.cmpf ole, %9, %12 : vector<8x128xf32>
    %cst_40 = arith.constant 0.000000e+00 : f32
    %109 = vector.broadcast %cst_4 : f32 to vector<8x128xf32>
    %110 = vector.broadcast %cst_40 : f32 to vector<8x128xf32>
    %111 = arith.select %108, %109, %110 : vector<8x128xi1>, vector<8x128xf32>
    %112 = arith.addf %107, %111 : vector<8x128xf32>
    %113 = arith.cmpf ole, %12, %12 : vector<8x128xf32>
    %cst_41 = arith.constant 0.000000e+00 : f32
    %114 = vector.broadcast %cst_4 : f32 to vector<8x128xf32>
    %115 = vector.broadcast %cst_41 : f32 to vector<8x128xf32>
    %116 = arith.select %113, %114, %115 : vector<8x128xi1>, vector<8x128xf32>
    %117 = arith.addf %112, %116 : vector<8x128xf32>
    %118 = arith.cmpf ole, %15, %12 : vector<8x128xf32>
    %cst_42 = arith.constant 0.000000e+00 : f32
    %119 = vector.broadcast %cst_4 : f32 to vector<8x128xf32>
    %120 = vector.broadcast %cst_42 : f32 to vector<8x128xf32>
    %121 = arith.select %118, %119, %120 : vector<8x128xi1>, vector<8x128xf32>
    %122 = arith.addf %117, %121 : vector<8x128xf32>
    %123 = arith.cmpf ole, %18, %12 : vector<8x128xf32>
    %cst_43 = arith.constant 0.000000e+00 : f32
    %124 = vector.broadcast %cst_4 : f32 to vector<8x128xf32>
    %125 = vector.broadcast %cst_43 : f32 to vector<8x128xf32>
    %126 = arith.select %123, %124, %125 : vector<8x128xi1>, vector<8x128xf32>
    %127 = arith.addf %122, %126 : vector<8x128xf32>
    %128 = arith.cmpf ole, %21, %12 : vector<8x128xf32>
    %cst_44 = arith.constant 0.000000e+00 : f32
    %129 = vector.broadcast %cst_5 : f32 to vector<8x128xf32>
    %130 = vector.broadcast %cst_44 : f32 to vector<8x128xf32>
    %131 = arith.select %128, %129, %130 : vector<8x128xi1>, vector<8x128xf32>
    %132 = arith.subf %127, %131 : vector<8x128xf32>
    %133 = arith.cmpf ole, %24, %12 : vector<8x128xf32>
    %cst_45 = arith.constant 0.000000e+00 : f32
    %134 = vector.broadcast %cst_5 : f32 to vector<8x128xf32>
    %135 = vector.broadcast %cst_45 : f32 to vector<8x128xf32>
    %136 = arith.select %133, %134, %135 : vector<8x128xi1>, vector<8x128xf32>
    %137 = arith.subf %132, %136 : vector<8x128xf32>
    %138 = arith.cmpf ole, %27, %12 : vector<8x128xf32>
    %cst_46 = arith.constant 0.000000e+00 : f32
    %139 = vector.broadcast %cst_5 : f32 to vector<8x128xf32>
    %140 = vector.broadcast %cst_46 : f32 to vector<8x128xf32>
    %141 = arith.select %138, %139, %140 : vector<8x128xi1>, vector<8x128xf32>
    %142 = arith.subf %137, %141 : vector<8x128xf32>
    %143 = arith.cmpf ole, %30, %12 : vector<8x128xf32>
    %cst_47 = arith.constant 0.000000e+00 : f32
    %144 = vector.broadcast %cst_5 : f32 to vector<8x128xf32>
    %145 = vector.broadcast %cst_47 : f32 to vector<8x128xf32>
    %146 = arith.select %143, %144, %145 : vector<8x128xi1>, vector<8x128xf32>
    %147 = arith.subf %142, %146 : vector<8x128xf32>
    %148 = arith.cmpf ole, %33, %12 : vector<8x128xf32>
    %cst_48 = arith.constant 0.000000e+00 : f32
    %149 = vector.broadcast %cst_5 : f32 to vector<8x128xf32>
    %150 = vector.broadcast %cst_48 : f32 to vector<8x128xf32>
    %151 = arith.select %148, %149, %150 : vector<8x128xi1>, vector<8x128xf32>
    %152 = arith.subf %147, %151 : vector<8x128xf32>
    %153 = arith.cmpf ole, %36, %12 : vector<8x128xf32>
    %cst_49 = arith.constant 0.000000e+00 : f32
    %154 = vector.broadcast %cst_5 : f32 to vector<8x128xf32>
    %155 = vector.broadcast %cst_49 : f32 to vector<8x128xf32>
    %156 = arith.select %153, %154, %155 : vector<8x128xi1>, vector<8x128xf32>
    %157 = arith.subf %152, %156 : vector<8x128xf32>
    %158 = arith.cmpf ole, %39, %12 : vector<8x128xf32>
    %cst_50 = arith.constant 0.000000e+00 : f32
    %159 = vector.broadcast %cst_5 : f32 to vector<8x128xf32>
    %160 = vector.broadcast %cst_50 : f32 to vector<8x128xf32>
    %161 = arith.select %158, %159, %160 : vector<8x128xi1>, vector<8x128xf32>
    %162 = arith.subf %157, %161 : vector<8x128xf32>
    %163 = arith.cmpf ole, %42, %12 : vector<8x128xf32>
    %cst_51 = arith.constant 0.000000e+00 : f32
    %164 = vector.broadcast %cst_5 : f32 to vector<8x128xf32>
    %165 = vector.broadcast %cst_51 : f32 to vector<8x128xf32>
    %166 = arith.select %163, %164, %165 : vector<8x128xi1>, vector<8x128xf32>
    %167 = arith.subf %162, %166 : vector<8x128xf32>
    %168 = math.absf %167 : vector<8x128xf32>
    %169 = arith.maximumf %106, %168 : vector<8x128xf32>
    %cst_52 = arith.constant 0.000000e+00 : f32
    %170 = vector.broadcast %cst_52 : f32 to vector<8x128xf32>
    %171 = arith.cmpf ole, %9, %15 : vector<8x128xf32>
    %cst_53 = arith.constant 0.000000e+00 : f32
    %172 = vector.broadcast %cst_4 : f32 to vector<8x128xf32>
    %173 = vector.broadcast %cst_53 : f32 to vector<8x128xf32>
    %174 = arith.select %171, %172, %173 : vector<8x128xi1>, vector<8x128xf32>
    %175 = arith.addf %170, %174 : vector<8x128xf32>
    %176 = arith.cmpf ole, %12, %15 : vector<8x128xf32>
    %cst_54 = arith.constant 0.000000e+00 : f32
    %177 = vector.broadcast %cst_4 : f32 to vector<8x128xf32>
    %178 = vector.broadcast %cst_54 : f32 to vector<8x128xf32>
    %179 = arith.select %176, %177, %178 : vector<8x128xi1>, vector<8x128xf32>
    %180 = arith.addf %175, %179 : vector<8x128xf32>
    %181 = arith.cmpf ole, %15, %15 : vector<8x128xf32>
    %cst_55 = arith.constant 0.000000e+00 : f32
    %182 = vector.broadcast %cst_4 : f32 to vector<8x128xf32>
    %183 = vector.broadcast %cst_55 : f32 to vector<8x128xf32>
    %184 = arith.select %181, %182, %183 : vector<8x128xi1>, vector<8x128xf32>
    %185 = arith.addf %180, %184 : vector<8x128xf32>
    %186 = arith.cmpf ole, %18, %15 : vector<8x128xf32>
    %cst_56 = arith.constant 0.000000e+00 : f32
    %187 = vector.broadcast %cst_4 : f32 to vector<8x128xf32>
    %188 = vector.broadcast %cst_56 : f32 to vector<8x128xf32>
    %189 = arith.select %186, %187, %188 : vector<8x128xi1>, vector<8x128xf32>
    %190 = arith.addf %185, %189 : vector<8x128xf32>
    %191 = arith.cmpf ole, %21, %15 : vector<8x128xf32>
    %cst_57 = arith.constant 0.000000e+00 : f32
    %192 = vector.broadcast %cst_5 : f32 to vector<8x128xf32>
    %193 = vector.broadcast %cst_57 : f32 to vector<8x128xf32>
    %194 = arith.select %191, %192, %193 : vector<8x128xi1>, vector<8x128xf32>
    %195 = arith.subf %190, %194 : vector<8x128xf32>
    %196 = arith.cmpf ole, %24, %15 : vector<8x128xf32>
    %cst_58 = arith.constant 0.000000e+00 : f32
    %197 = vector.broadcast %cst_5 : f32 to vector<8x128xf32>
    %198 = vector.broadcast %cst_58 : f32 to vector<8x128xf32>
    %199 = arith.select %196, %197, %198 : vector<8x128xi1>, vector<8x128xf32>
    %200 = arith.subf %195, %199 : vector<8x128xf32>
    %201 = arith.cmpf ole, %27, %15 : vector<8x128xf32>
    %cst_59 = arith.constant 0.000000e+00 : f32
    %202 = vector.broadcast %cst_5 : f32 to vector<8x128xf32>
    %203 = vector.broadcast %cst_59 : f32 to vector<8x128xf32>
    %204 = arith.select %201, %202, %203 : vector<8x128xi1>, vector<8x128xf32>
    %205 = arith.subf %200, %204 : vector<8x128xf32>
    %206 = arith.cmpf ole, %30, %15 : vector<8x128xf32>
    %cst_60 = arith.constant 0.000000e+00 : f32
    %207 = vector.broadcast %cst_5 : f32 to vector<8x128xf32>
    %208 = vector.broadcast %cst_60 : f32 to vector<8x128xf32>
    %209 = arith.select %206, %207, %208 : vector<8x128xi1>, vector<8x128xf32>
    %210 = arith.subf %205, %209 : vector<8x128xf32>
    %211 = arith.cmpf ole, %33, %15 : vector<8x128xf32>
    %cst_61 = arith.constant 0.000000e+00 : f32
    %212 = vector.broadcast %cst_5 : f32 to vector<8x128xf32>
    %213 = vector.broadcast %cst_61 : f32 to vector<8x128xf32>
    %214 = arith.select %211, %212, %213 : vector<8x128xi1>, vector<8x128xf32>
    %215 = arith.subf %210, %214 : vector<8x128xf32>
    %216 = arith.cmpf ole, %36, %15 : vector<8x128xf32>
    %cst_62 = arith.constant 0.000000e+00 : f32
    %217 = vector.broadcast %cst_5 : f32 to vector<8x128xf32>
    %218 = vector.broadcast %cst_62 : f32 to vector<8x128xf32>
    %219 = arith.select %216, %217, %218 : vector<8x128xi1>, vector<8x128xf32>
    %220 = arith.subf %215, %219 : vector<8x128xf32>
    %221 = arith.cmpf ole, %39, %15 : vector<8x128xf32>
    %cst_63 = arith.constant 0.000000e+00 : f32
    %222 = vector.broadcast %cst_5 : f32 to vector<8x128xf32>
    %223 = vector.broadcast %cst_63 : f32 to vector<8x128xf32>
    %224 = arith.select %221, %222, %223 : vector<8x128xi1>, vector<8x128xf32>
    %225 = arith.subf %220, %224 : vector<8x128xf32>
    %226 = arith.cmpf ole, %42, %15 : vector<8x128xf32>
    %cst_64 = arith.constant 0.000000e+00 : f32
    %227 = vector.broadcast %cst_5 : f32 to vector<8x128xf32>
    %228 = vector.broadcast %cst_64 : f32 to vector<8x128xf32>
    %229 = arith.select %226, %227, %228 : vector<8x128xi1>, vector<8x128xf32>
    %230 = arith.subf %225, %229 : vector<8x128xf32>
    %231 = math.absf %230 : vector<8x128xf32>
    %232 = arith.maximumf %169, %231 : vector<8x128xf32>
    %cst_65 = arith.constant 0.000000e+00 : f32
    %233 = vector.broadcast %cst_65 : f32 to vector<8x128xf32>
    %234 = arith.cmpf ole, %9, %18 : vector<8x128xf32>
    %cst_66 = arith.constant 0.000000e+00 : f32
    %235 = vector.broadcast %cst_4 : f32 to vector<8x128xf32>
    %236 = vector.broadcast %cst_66 : f32 to vector<8x128xf32>
    %237 = arith.select %234, %235, %236 : vector<8x128xi1>, vector<8x128xf32>
    %238 = arith.addf %233, %237 : vector<8x128xf32>
    %239 = arith.cmpf ole, %12, %18 : vector<8x128xf32>
    %cst_67 = arith.constant 0.000000e+00 : f32
    %240 = vector.broadcast %cst_4 : f32 to vector<8x128xf32>
    %241 = vector.broadcast %cst_67 : f32 to vector<8x128xf32>
    %242 = arith.select %239, %240, %241 : vector<8x128xi1>, vector<8x128xf32>
    %243 = arith.addf %238, %242 : vector<8x128xf32>
    %244 = arith.cmpf ole, %15, %18 : vector<8x128xf32>
    %cst_68 = arith.constant 0.000000e+00 : f32
    %245 = vector.broadcast %cst_4 : f32 to vector<8x128xf32>
    %246 = vector.broadcast %cst_68 : f32 to vector<8x128xf32>
    %247 = arith.select %244, %245, %246 : vector<8x128xi1>, vector<8x128xf32>
    %248 = arith.addf %243, %247 : vector<8x128xf32>
    %249 = arith.cmpf ole, %18, %18 : vector<8x128xf32>
    %cst_69 = arith.constant 0.000000e+00 : f32
    %250 = vector.broadcast %cst_4 : f32 to vector<8x128xf32>
    %251 = vector.broadcast %cst_69 : f32 to vector<8x128xf32>
    %252 = arith.select %249, %250, %251 : vector<8x128xi1>, vector<8x128xf32>
    %253 = arith.addf %248, %252 : vector<8x128xf32>
    %254 = arith.cmpf ole, %21, %18 : vector<8x128xf32>
    %cst_70 = arith.constant 0.000000e+00 : f32
    %255 = vector.broadcast %cst_5 : f32 to vector<8x128xf32>
    %256 = vector.broadcast %cst_70 : f32 to vector<8x128xf32>
    %257 = arith.select %254, %255, %256 : vector<8x128xi1>, vector<8x128xf32>
    %258 = arith.subf %253, %257 : vector<8x128xf32>
    %259 = arith.cmpf ole, %24, %18 : vector<8x128xf32>
    %cst_71 = arith.constant 0.000000e+00 : f32
    %260 = vector.broadcast %cst_5 : f32 to vector<8x128xf32>
    %261 = vector.broadcast %cst_71 : f32 to vector<8x128xf32>
    %262 = arith.select %259, %260, %261 : vector<8x128xi1>, vector<8x128xf32>
    %263 = arith.subf %258, %262 : vector<8x128xf32>
    %264 = arith.cmpf ole, %27, %18 : vector<8x128xf32>
    %cst_72 = arith.constant 0.000000e+00 : f32
    %265 = vector.broadcast %cst_5 : f32 to vector<8x128xf32>
    %266 = vector.broadcast %cst_72 : f32 to vector<8x128xf32>
    %267 = arith.select %264, %265, %266 : vector<8x128xi1>, vector<8x128xf32>
    %268 = arith.subf %263, %267 : vector<8x128xf32>
    %269 = arith.cmpf ole, %30, %18 : vector<8x128xf32>
    %cst_73 = arith.constant 0.000000e+00 : f32
    %270 = vector.broadcast %cst_5 : f32 to vector<8x128xf32>
    %271 = vector.broadcast %cst_73 : f32 to vector<8x128xf32>
    %272 = arith.select %269, %270, %271 : vector<8x128xi1>, vector<8x128xf32>
    %273 = arith.subf %268, %272 : vector<8x128xf32>
    %274 = arith.cmpf ole, %33, %18 : vector<8x128xf32>
    %cst_74 = arith.constant 0.000000e+00 : f32
    %275 = vector.broadcast %cst_5 : f32 to vector<8x128xf32>
    %276 = vector.broadcast %cst_74 : f32 to vector<8x128xf32>
    %277 = arith.select %274, %275, %276 : vector<8x128xi1>, vector<8x128xf32>
    %278 = arith.subf %273, %277 : vector<8x128xf32>
    %279 = arith.cmpf ole, %36, %18 : vector<8x128xf32>
    %cst_75 = arith.constant 0.000000e+00 : f32
    %280 = vector.broadcast %cst_5 : f32 to vector<8x128xf32>
    %281 = vector.broadcast %cst_75 : f32 to vector<8x128xf32>
    %282 = arith.select %279, %280, %281 : vector<8x128xi1>, vector<8x128xf32>
    %283 = arith.subf %278, %282 : vector<8x128xf32>
    %284 = arith.cmpf ole, %39, %18 : vector<8x128xf32>
    %cst_76 = arith.constant 0.000000e+00 : f32
    %285 = vector.broadcast %cst_5 : f32 to vector<8x128xf32>
    %286 = vector.broadcast %cst_76 : f32 to vector<8x128xf32>
    %287 = arith.select %284, %285, %286 : vector<8x128xi1>, vector<8x128xf32>
    %288 = arith.subf %283, %287 : vector<8x128xf32>
    %289 = arith.cmpf ole, %42, %18 : vector<8x128xf32>
    %cst_77 = arith.constant 0.000000e+00 : f32
    %290 = vector.broadcast %cst_5 : f32 to vector<8x128xf32>
    %291 = vector.broadcast %cst_77 : f32 to vector<8x128xf32>
    %292 = arith.select %289, %290, %291 : vector<8x128xi1>, vector<8x128xf32>
    %293 = arith.subf %288, %292 : vector<8x128xf32>
    %294 = math.absf %293 : vector<8x128xf32>
    %295 = arith.maximumf %232, %294 : vector<8x128xf32>
    %cst_78 = arith.constant 0.000000e+00 : f32
    %296 = vector.broadcast %cst_78 : f32 to vector<8x128xf32>
    %297 = arith.cmpf ole, %9, %21 : vector<8x128xf32>
    %cst_79 = arith.constant 0.000000e+00 : f32
    %298 = vector.broadcast %cst_4 : f32 to vector<8x128xf32>
    %299 = vector.broadcast %cst_79 : f32 to vector<8x128xf32>
    %300 = arith.select %297, %298, %299 : vector<8x128xi1>, vector<8x128xf32>
    %301 = arith.addf %296, %300 : vector<8x128xf32>
    %302 = arith.cmpf ole, %12, %21 : vector<8x128xf32>
    %cst_80 = arith.constant 0.000000e+00 : f32
    %303 = vector.broadcast %cst_4 : f32 to vector<8x128xf32>
    %304 = vector.broadcast %cst_80 : f32 to vector<8x128xf32>
    %305 = arith.select %302, %303, %304 : vector<8x128xi1>, vector<8x128xf32>
    %306 = arith.addf %301, %305 : vector<8x128xf32>
    %307 = arith.cmpf ole, %15, %21 : vector<8x128xf32>
    %cst_81 = arith.constant 0.000000e+00 : f32
    %308 = vector.broadcast %cst_4 : f32 to vector<8x128xf32>
    %309 = vector.broadcast %cst_81 : f32 to vector<8x128xf32>
    %310 = arith.select %307, %308, %309 : vector<8x128xi1>, vector<8x128xf32>
    %311 = arith.addf %306, %310 : vector<8x128xf32>
    %312 = arith.cmpf ole, %18, %21 : vector<8x128xf32>
    %cst_82 = arith.constant 0.000000e+00 : f32
    %313 = vector.broadcast %cst_4 : f32 to vector<8x128xf32>
    %314 = vector.broadcast %cst_82 : f32 to vector<8x128xf32>
    %315 = arith.select %312, %313, %314 : vector<8x128xi1>, vector<8x128xf32>
    %316 = arith.addf %311, %315 : vector<8x128xf32>
    %317 = arith.cmpf ole, %21, %21 : vector<8x128xf32>
    %cst_83 = arith.constant 0.000000e+00 : f32
    %318 = vector.broadcast %cst_5 : f32 to vector<8x128xf32>
    %319 = vector.broadcast %cst_83 : f32 to vector<8x128xf32>
    %320 = arith.select %317, %318, %319 : vector<8x128xi1>, vector<8x128xf32>
    %321 = arith.subf %316, %320 : vector<8x128xf32>
    %322 = arith.cmpf ole, %24, %21 : vector<8x128xf32>
    %cst_84 = arith.constant 0.000000e+00 : f32
    %323 = vector.broadcast %cst_5 : f32 to vector<8x128xf32>
    %324 = vector.broadcast %cst_84 : f32 to vector<8x128xf32>
    %325 = arith.select %322, %323, %324 : vector<8x128xi1>, vector<8x128xf32>
    %326 = arith.subf %321, %325 : vector<8x128xf32>
    %327 = arith.cmpf ole, %27, %21 : vector<8x128xf32>
    %cst_85 = arith.constant 0.000000e+00 : f32
    %328 = vector.broadcast %cst_5 : f32 to vector<8x128xf32>
    %329 = vector.broadcast %cst_85 : f32 to vector<8x128xf32>
    %330 = arith.select %327, %328, %329 : vector<8x128xi1>, vector<8x128xf32>
    %331 = arith.subf %326, %330 : vector<8x128xf32>
    %332 = arith.cmpf ole, %30, %21 : vector<8x128xf32>
    %cst_86 = arith.constant 0.000000e+00 : f32
    %333 = vector.broadcast %cst_5 : f32 to vector<8x128xf32>
    %334 = vector.broadcast %cst_86 : f32 to vector<8x128xf32>
    %335 = arith.select %332, %333, %334 : vector<8x128xi1>, vector<8x128xf32>
    %336 = arith.subf %331, %335 : vector<8x128xf32>
    %337 = arith.cmpf ole, %33, %21 : vector<8x128xf32>
    %cst_87 = arith.constant 0.000000e+00 : f32
    %338 = vector.broadcast %cst_5 : f32 to vector<8x128xf32>
    %339 = vector.broadcast %cst_87 : f32 to vector<8x128xf32>
    %340 = arith.select %337, %338, %339 : vector<8x128xi1>, vector<8x128xf32>
    %341 = arith.subf %336, %340 : vector<8x128xf32>
    %342 = arith.cmpf ole, %36, %21 : vector<8x128xf32>
    %cst_88 = arith.constant 0.000000e+00 : f32
    %343 = vector.broadcast %cst_5 : f32 to vector<8x128xf32>
    %344 = vector.broadcast %cst_88 : f32 to vector<8x128xf32>
    %345 = arith.select %342, %343, %344 : vector<8x128xi1>, vector<8x128xf32>
    %346 = arith.subf %341, %345 : vector<8x128xf32>
    %347 = arith.cmpf ole, %39, %21 : vector<8x128xf32>
    %cst_89 = arith.constant 0.000000e+00 : f32
    %348 = vector.broadcast %cst_5 : f32 to vector<8x128xf32>
    %349 = vector.broadcast %cst_89 : f32 to vector<8x128xf32>
    %350 = arith.select %347, %348, %349 : vector<8x128xi1>, vector<8x128xf32>
    %351 = arith.subf %346, %350 : vector<8x128xf32>
    %352 = arith.cmpf ole, %42, %21 : vector<8x128xf32>
    %cst_90 = arith.constant 0.000000e+00 : f32
    %353 = vector.broadcast %cst_5 : f32 to vector<8x128xf32>
    %354 = vector.broadcast %cst_90 : f32 to vector<8x128xf32>
    %355 = arith.select %352, %353, %354 : vector<8x128xi1>, vector<8x128xf32>
    %356 = arith.subf %351, %355 : vector<8x128xf32>
    %357 = math.absf %356 : vector<8x128xf32>
    %358 = arith.maximumf %295, %357 : vector<8x128xf32>
    %cst_91 = arith.constant 0.000000e+00 : f32
    %359 = vector.broadcast %cst_91 : f32 to vector<8x128xf32>
    %360 = arith.cmpf ole, %9, %24 : vector<8x128xf32>
    %cst_92 = arith.constant 0.000000e+00 : f32
    %361 = vector.broadcast %cst_4 : f32 to vector<8x128xf32>
    %362 = vector.broadcast %cst_92 : f32 to vector<8x128xf32>
    %363 = arith.select %360, %361, %362 : vector<8x128xi1>, vector<8x128xf32>
    %364 = arith.addf %359, %363 : vector<8x128xf32>
    %365 = arith.cmpf ole, %12, %24 : vector<8x128xf32>
    %cst_93 = arith.constant 0.000000e+00 : f32
    %366 = vector.broadcast %cst_4 : f32 to vector<8x128xf32>
    %367 = vector.broadcast %cst_93 : f32 to vector<8x128xf32>
    %368 = arith.select %365, %366, %367 : vector<8x128xi1>, vector<8x128xf32>
    %369 = arith.addf %364, %368 : vector<8x128xf32>
    %370 = arith.cmpf ole, %15, %24 : vector<8x128xf32>
    %cst_94 = arith.constant 0.000000e+00 : f32
    %371 = vector.broadcast %cst_4 : f32 to vector<8x128xf32>
    %372 = vector.broadcast %cst_94 : f32 to vector<8x128xf32>
    %373 = arith.select %370, %371, %372 : vector<8x128xi1>, vector<8x128xf32>
    %374 = arith.addf %369, %373 : vector<8x128xf32>
    %375 = arith.cmpf ole, %18, %24 : vector<8x128xf32>
    %cst_95 = arith.constant 0.000000e+00 : f32
    %376 = vector.broadcast %cst_4 : f32 to vector<8x128xf32>
    %377 = vector.broadcast %cst_95 : f32 to vector<8x128xf32>
    %378 = arith.select %375, %376, %377 : vector<8x128xi1>, vector<8x128xf32>
    %379 = arith.addf %374, %378 : vector<8x128xf32>
    %380 = arith.cmpf ole, %21, %24 : vector<8x128xf32>
    %cst_96 = arith.constant 0.000000e+00 : f32
    %381 = vector.broadcast %cst_5 : f32 to vector<8x128xf32>
    %382 = vector.broadcast %cst_96 : f32 to vector<8x128xf32>
    %383 = arith.select %380, %381, %382 : vector<8x128xi1>, vector<8x128xf32>
    %384 = arith.subf %379, %383 : vector<8x128xf32>
    %385 = arith.cmpf ole, %24, %24 : vector<8x128xf32>
    %cst_97 = arith.constant 0.000000e+00 : f32
    %386 = vector.broadcast %cst_5 : f32 to vector<8x128xf32>
    %387 = vector.broadcast %cst_97 : f32 to vector<8x128xf32>
    %388 = arith.select %385, %386, %387 : vector<8x128xi1>, vector<8x128xf32>
    %389 = arith.subf %384, %388 : vector<8x128xf32>
    %390 = arith.cmpf ole, %27, %24 : vector<8x128xf32>
    %cst_98 = arith.constant 0.000000e+00 : f32
    %391 = vector.broadcast %cst_5 : f32 to vector<8x128xf32>
    %392 = vector.broadcast %cst_98 : f32 to vector<8x128xf32>
    %393 = arith.select %390, %391, %392 : vector<8x128xi1>, vector<8x128xf32>
    %394 = arith.subf %389, %393 : vector<8x128xf32>
    %395 = arith.cmpf ole, %30, %24 : vector<8x128xf32>
    %cst_99 = arith.constant 0.000000e+00 : f32
    %396 = vector.broadcast %cst_5 : f32 to vector<8x128xf32>
    %397 = vector.broadcast %cst_99 : f32 to vector<8x128xf32>
    %398 = arith.select %395, %396, %397 : vector<8x128xi1>, vector<8x128xf32>
    %399 = arith.subf %394, %398 : vector<8x128xf32>
    %400 = arith.cmpf ole, %33, %24 : vector<8x128xf32>
    %cst_100 = arith.constant 0.000000e+00 : f32
    %401 = vector.broadcast %cst_5 : f32 to vector<8x128xf32>
    %402 = vector.broadcast %cst_100 : f32 to vector<8x128xf32>
    %403 = arith.select %400, %401, %402 : vector<8x128xi1>, vector<8x128xf32>
    %404 = arith.subf %399, %403 : vector<8x128xf32>
    %405 = arith.cmpf ole, %36, %24 : vector<8x128xf32>
    %cst_101 = arith.constant 0.000000e+00 : f32
    %406 = vector.broadcast %cst_5 : f32 to vector<8x128xf32>
    %407 = vector.broadcast %cst_101 : f32 to vector<8x128xf32>
    %408 = arith.select %405, %406, %407 : vector<8x128xi1>, vector<8x128xf32>
    %409 = arith.subf %404, %408 : vector<8x128xf32>
    %410 = arith.cmpf ole, %39, %24 : vector<8x128xf32>
    %cst_102 = arith.constant 0.000000e+00 : f32
    %411 = vector.broadcast %cst_5 : f32 to vector<8x128xf32>
    %412 = vector.broadcast %cst_102 : f32 to vector<8x128xf32>
    %413 = arith.select %410, %411, %412 : vector<8x128xi1>, vector<8x128xf32>
    %414 = arith.subf %409, %413 : vector<8x128xf32>
    %415 = arith.cmpf ole, %42, %24 : vector<8x128xf32>
    %cst_103 = arith.constant 0.000000e+00 : f32
    %416 = vector.broadcast %cst_5 : f32 to vector<8x128xf32>
    %417 = vector.broadcast %cst_103 : f32 to vector<8x128xf32>
    %418 = arith.select %415, %416, %417 : vector<8x128xi1>, vector<8x128xf32>
    %419 = arith.subf %414, %418 : vector<8x128xf32>
    %420 = math.absf %419 : vector<8x128xf32>
    %421 = arith.maximumf %358, %420 : vector<8x128xf32>
    %cst_104 = arith.constant 0.000000e+00 : f32
    %422 = vector.broadcast %cst_104 : f32 to vector<8x128xf32>
    %423 = arith.cmpf ole, %9, %27 : vector<8x128xf32>
    %cst_105 = arith.constant 0.000000e+00 : f32
    %424 = vector.broadcast %cst_4 : f32 to vector<8x128xf32>
    %425 = vector.broadcast %cst_105 : f32 to vector<8x128xf32>
    %426 = arith.select %423, %424, %425 : vector<8x128xi1>, vector<8x128xf32>
    %427 = arith.addf %422, %426 : vector<8x128xf32>
    %428 = arith.cmpf ole, %12, %27 : vector<8x128xf32>
    %cst_106 = arith.constant 0.000000e+00 : f32
    %429 = vector.broadcast %cst_4 : f32 to vector<8x128xf32>
    %430 = vector.broadcast %cst_106 : f32 to vector<8x128xf32>
    %431 = arith.select %428, %429, %430 : vector<8x128xi1>, vector<8x128xf32>
    %432 = arith.addf %427, %431 : vector<8x128xf32>
    %433 = arith.cmpf ole, %15, %27 : vector<8x128xf32>
    %cst_107 = arith.constant 0.000000e+00 : f32
    %434 = vector.broadcast %cst_4 : f32 to vector<8x128xf32>
    %435 = vector.broadcast %cst_107 : f32 to vector<8x128xf32>
    %436 = arith.select %433, %434, %435 : vector<8x128xi1>, vector<8x128xf32>
    %437 = arith.addf %432, %436 : vector<8x128xf32>
    %438 = arith.cmpf ole, %18, %27 : vector<8x128xf32>
    %cst_108 = arith.constant 0.000000e+00 : f32
    %439 = vector.broadcast %cst_4 : f32 to vector<8x128xf32>
    %440 = vector.broadcast %cst_108 : f32 to vector<8x128xf32>
    %441 = arith.select %438, %439, %440 : vector<8x128xi1>, vector<8x128xf32>
    %442 = arith.addf %437, %441 : vector<8x128xf32>
    %443 = arith.cmpf ole, %21, %27 : vector<8x128xf32>
    %cst_109 = arith.constant 0.000000e+00 : f32
    %444 = vector.broadcast %cst_5 : f32 to vector<8x128xf32>
    %445 = vector.broadcast %cst_109 : f32 to vector<8x128xf32>
    %446 = arith.select %443, %444, %445 : vector<8x128xi1>, vector<8x128xf32>
    %447 = arith.subf %442, %446 : vector<8x128xf32>
    %448 = arith.cmpf ole, %24, %27 : vector<8x128xf32>
    %cst_110 = arith.constant 0.000000e+00 : f32
    %449 = vector.broadcast %cst_5 : f32 to vector<8x128xf32>
    %450 = vector.broadcast %cst_110 : f32 to vector<8x128xf32>
    %451 = arith.select %448, %449, %450 : vector<8x128xi1>, vector<8x128xf32>
    %452 = arith.subf %447, %451 : vector<8x128xf32>
    %453 = arith.cmpf ole, %27, %27 : vector<8x128xf32>
    %cst_111 = arith.constant 0.000000e+00 : f32
    %454 = vector.broadcast %cst_5 : f32 to vector<8x128xf32>
    %455 = vector.broadcast %cst_111 : f32 to vector<8x128xf32>
    %456 = arith.select %453, %454, %455 : vector<8x128xi1>, vector<8x128xf32>
    %457 = arith.subf %452, %456 : vector<8x128xf32>
    %458 = arith.cmpf ole, %30, %27 : vector<8x128xf32>
    %cst_112 = arith.constant 0.000000e+00 : f32
    %459 = vector.broadcast %cst_5 : f32 to vector<8x128xf32>
    %460 = vector.broadcast %cst_112 : f32 to vector<8x128xf32>
    %461 = arith.select %458, %459, %460 : vector<8x128xi1>, vector<8x128xf32>
    %462 = arith.subf %457, %461 : vector<8x128xf32>
    %463 = arith.cmpf ole, %33, %27 : vector<8x128xf32>
    %cst_113 = arith.constant 0.000000e+00 : f32
    %464 = vector.broadcast %cst_5 : f32 to vector<8x128xf32>
    %465 = vector.broadcast %cst_113 : f32 to vector<8x128xf32>
    %466 = arith.select %463, %464, %465 : vector<8x128xi1>, vector<8x128xf32>
    %467 = arith.subf %462, %466 : vector<8x128xf32>
    %468 = arith.cmpf ole, %36, %27 : vector<8x128xf32>
    %cst_114 = arith.constant 0.000000e+00 : f32
    %469 = vector.broadcast %cst_5 : f32 to vector<8x128xf32>
    %470 = vector.broadcast %cst_114 : f32 to vector<8x128xf32>
    %471 = arith.select %468, %469, %470 : vector<8x128xi1>, vector<8x128xf32>
    %472 = arith.subf %467, %471 : vector<8x128xf32>
    %473 = arith.cmpf ole, %39, %27 : vector<8x128xf32>
    %cst_115 = arith.constant 0.000000e+00 : f32
    %474 = vector.broadcast %cst_5 : f32 to vector<8x128xf32>
    %475 = vector.broadcast %cst_115 : f32 to vector<8x128xf32>
    %476 = arith.select %473, %474, %475 : vector<8x128xi1>, vector<8x128xf32>
    %477 = arith.subf %472, %476 : vector<8x128xf32>
    %478 = arith.cmpf ole, %42, %27 : vector<8x128xf32>
    %cst_116 = arith.constant 0.000000e+00 : f32
    %479 = vector.broadcast %cst_5 : f32 to vector<8x128xf32>
    %480 = vector.broadcast %cst_116 : f32 to vector<8x128xf32>
    %481 = arith.select %478, %479, %480 : vector<8x128xi1>, vector<8x128xf32>
    %482 = arith.subf %477, %481 : vector<8x128xf32>
    %483 = math.absf %482 : vector<8x128xf32>
    %484 = arith.maximumf %421, %483 : vector<8x128xf32>
    %cst_117 = arith.constant 0.000000e+00 : f32
    %485 = vector.broadcast %cst_117 : f32 to vector<8x128xf32>
    %486 = arith.cmpf ole, %9, %30 : vector<8x128xf32>
    %cst_118 = arith.constant 0.000000e+00 : f32
    %487 = vector.broadcast %cst_4 : f32 to vector<8x128xf32>
    %488 = vector.broadcast %cst_118 : f32 to vector<8x128xf32>
    %489 = arith.select %486, %487, %488 : vector<8x128xi1>, vector<8x128xf32>
    %490 = arith.addf %485, %489 : vector<8x128xf32>
    %491 = arith.cmpf ole, %12, %30 : vector<8x128xf32>
    %cst_119 = arith.constant 0.000000e+00 : f32
    %492 = vector.broadcast %cst_4 : f32 to vector<8x128xf32>
    %493 = vector.broadcast %cst_119 : f32 to vector<8x128xf32>
    %494 = arith.select %491, %492, %493 : vector<8x128xi1>, vector<8x128xf32>
    %495 = arith.addf %490, %494 : vector<8x128xf32>
    %496 = arith.cmpf ole, %15, %30 : vector<8x128xf32>
    %cst_120 = arith.constant 0.000000e+00 : f32
    %497 = vector.broadcast %cst_4 : f32 to vector<8x128xf32>
    %498 = vector.broadcast %cst_120 : f32 to vector<8x128xf32>
    %499 = arith.select %496, %497, %498 : vector<8x128xi1>, vector<8x128xf32>
    %500 = arith.addf %495, %499 : vector<8x128xf32>
    %501 = arith.cmpf ole, %18, %30 : vector<8x128xf32>
    %cst_121 = arith.constant 0.000000e+00 : f32
    %502 = vector.broadcast %cst_4 : f32 to vector<8x128xf32>
    %503 = vector.broadcast %cst_121 : f32 to vector<8x128xf32>
    %504 = arith.select %501, %502, %503 : vector<8x128xi1>, vector<8x128xf32>
    %505 = arith.addf %500, %504 : vector<8x128xf32>
    %506 = arith.cmpf ole, %21, %30 : vector<8x128xf32>
    %cst_122 = arith.constant 0.000000e+00 : f32
    %507 = vector.broadcast %cst_5 : f32 to vector<8x128xf32>
    %508 = vector.broadcast %cst_122 : f32 to vector<8x128xf32>
    %509 = arith.select %506, %507, %508 : vector<8x128xi1>, vector<8x128xf32>
    %510 = arith.subf %505, %509 : vector<8x128xf32>
    %511 = arith.cmpf ole, %24, %30 : vector<8x128xf32>
    %cst_123 = arith.constant 0.000000e+00 : f32
    %512 = vector.broadcast %cst_5 : f32 to vector<8x128xf32>
    %513 = vector.broadcast %cst_123 : f32 to vector<8x128xf32>
    %514 = arith.select %511, %512, %513 : vector<8x128xi1>, vector<8x128xf32>
    %515 = arith.subf %510, %514 : vector<8x128xf32>
    %516 = arith.cmpf ole, %27, %30 : vector<8x128xf32>
    %cst_124 = arith.constant 0.000000e+00 : f32
    %517 = vector.broadcast %cst_5 : f32 to vector<8x128xf32>
    %518 = vector.broadcast %cst_124 : f32 to vector<8x128xf32>
    %519 = arith.select %516, %517, %518 : vector<8x128xi1>, vector<8x128xf32>
    %520 = arith.subf %515, %519 : vector<8x128xf32>
    %521 = arith.cmpf ole, %30, %30 : vector<8x128xf32>
    %cst_125 = arith.constant 0.000000e+00 : f32
    %522 = vector.broadcast %cst_5 : f32 to vector<8x128xf32>
    %523 = vector.broadcast %cst_125 : f32 to vector<8x128xf32>
    %524 = arith.select %521, %522, %523 : vector<8x128xi1>, vector<8x128xf32>
    %525 = arith.subf %520, %524 : vector<8x128xf32>
    %526 = arith.cmpf ole, %33, %30 : vector<8x128xf32>
    %cst_126 = arith.constant 0.000000e+00 : f32
    %527 = vector.broadcast %cst_5 : f32 to vector<8x128xf32>
    %528 = vector.broadcast %cst_126 : f32 to vector<8x128xf32>
    %529 = arith.select %526, %527, %528 : vector<8x128xi1>, vector<8x128xf32>
    %530 = arith.subf %525, %529 : vector<8x128xf32>
    %531 = arith.cmpf ole, %36, %30 : vector<8x128xf32>
    %cst_127 = arith.constant 0.000000e+00 : f32
    %532 = vector.broadcast %cst_5 : f32 to vector<8x128xf32>
    %533 = vector.broadcast %cst_127 : f32 to vector<8x128xf32>
    %534 = arith.select %531, %532, %533 : vector<8x128xi1>, vector<8x128xf32>
    %535 = arith.subf %530, %534 : vector<8x128xf32>
    %536 = arith.cmpf ole, %39, %30 : vector<8x128xf32>
    %cst_128 = arith.constant 0.000000e+00 : f32
    %537 = vector.broadcast %cst_5 : f32 to vector<8x128xf32>
    %538 = vector.broadcast %cst_128 : f32 to vector<8x128xf32>
    %539 = arith.select %536, %537, %538 : vector<8x128xi1>, vector<8x128xf32>
    %540 = arith.subf %535, %539 : vector<8x128xf32>
    %541 = arith.cmpf ole, %42, %30 : vector<8x128xf32>
    %cst_129 = arith.constant 0.000000e+00 : f32
    %542 = vector.broadcast %cst_5 : f32 to vector<8x128xf32>
    %543 = vector.broadcast %cst_129 : f32 to vector<8x128xf32>
    %544 = arith.select %541, %542, %543 : vector<8x128xi1>, vector<8x128xf32>
    %545 = arith.subf %540, %544 : vector<8x128xf32>
    %546 = math.absf %545 : vector<8x128xf32>
    %547 = arith.maximumf %484, %546 : vector<8x128xf32>
    %cst_130 = arith.constant 0.000000e+00 : f32
    %548 = vector.broadcast %cst_130 : f32 to vector<8x128xf32>
    %549 = arith.cmpf ole, %9, %33 : vector<8x128xf32>
    %cst_131 = arith.constant 0.000000e+00 : f32
    %550 = vector.broadcast %cst_4 : f32 to vector<8x128xf32>
    %551 = vector.broadcast %cst_131 : f32 to vector<8x128xf32>
    %552 = arith.select %549, %550, %551 : vector<8x128xi1>, vector<8x128xf32>
    %553 = arith.addf %548, %552 : vector<8x128xf32>
    %554 = arith.cmpf ole, %12, %33 : vector<8x128xf32>
    %cst_132 = arith.constant 0.000000e+00 : f32
    %555 = vector.broadcast %cst_4 : f32 to vector<8x128xf32>
    %556 = vector.broadcast %cst_132 : f32 to vector<8x128xf32>
    %557 = arith.select %554, %555, %556 : vector<8x128xi1>, vector<8x128xf32>
    %558 = arith.addf %553, %557 : vector<8x128xf32>
    %559 = arith.cmpf ole, %15, %33 : vector<8x128xf32>
    %cst_133 = arith.constant 0.000000e+00 : f32
    %560 = vector.broadcast %cst_4 : f32 to vector<8x128xf32>
    %561 = vector.broadcast %cst_133 : f32 to vector<8x128xf32>
    %562 = arith.select %559, %560, %561 : vector<8x128xi1>, vector<8x128xf32>
    %563 = arith.addf %558, %562 : vector<8x128xf32>
    %564 = arith.cmpf ole, %18, %33 : vector<8x128xf32>
    %cst_134 = arith.constant 0.000000e+00 : f32
    %565 = vector.broadcast %cst_4 : f32 to vector<8x128xf32>
    %566 = vector.broadcast %cst_134 : f32 to vector<8x128xf32>
    %567 = arith.select %564, %565, %566 : vector<8x128xi1>, vector<8x128xf32>
    %568 = arith.addf %563, %567 : vector<8x128xf32>
    %569 = arith.cmpf ole, %21, %33 : vector<8x128xf32>
    %cst_135 = arith.constant 0.000000e+00 : f32
    %570 = vector.broadcast %cst_5 : f32 to vector<8x128xf32>
    %571 = vector.broadcast %cst_135 : f32 to vector<8x128xf32>
    %572 = arith.select %569, %570, %571 : vector<8x128xi1>, vector<8x128xf32>
    %573 = arith.subf %568, %572 : vector<8x128xf32>
    %574 = arith.cmpf ole, %24, %33 : vector<8x128xf32>
    %cst_136 = arith.constant 0.000000e+00 : f32
    %575 = vector.broadcast %cst_5 : f32 to vector<8x128xf32>
    %576 = vector.broadcast %cst_136 : f32 to vector<8x128xf32>
    %577 = arith.select %574, %575, %576 : vector<8x128xi1>, vector<8x128xf32>
    %578 = arith.subf %573, %577 : vector<8x128xf32>
    %579 = arith.cmpf ole, %27, %33 : vector<8x128xf32>
    %cst_137 = arith.constant 0.000000e+00 : f32
    %580 = vector.broadcast %cst_5 : f32 to vector<8x128xf32>
    %581 = vector.broadcast %cst_137 : f32 to vector<8x128xf32>
    %582 = arith.select %579, %580, %581 : vector<8x128xi1>, vector<8x128xf32>
    %583 = arith.subf %578, %582 : vector<8x128xf32>
    %584 = arith.cmpf ole, %30, %33 : vector<8x128xf32>
    %cst_138 = arith.constant 0.000000e+00 : f32
    %585 = vector.broadcast %cst_5 : f32 to vector<8x128xf32>
    %586 = vector.broadcast %cst_138 : f32 to vector<8x128xf32>
    %587 = arith.select %584, %585, %586 : vector<8x128xi1>, vector<8x128xf32>
    %588 = arith.subf %583, %587 : vector<8x128xf32>
    %589 = arith.cmpf ole, %33, %33 : vector<8x128xf32>
    %cst_139 = arith.constant 0.000000e+00 : f32
    %590 = vector.broadcast %cst_5 : f32 to vector<8x128xf32>
    %591 = vector.broadcast %cst_139 : f32 to vector<8x128xf32>
    %592 = arith.select %589, %590, %591 : vector<8x128xi1>, vector<8x128xf32>
    %593 = arith.subf %588, %592 : vector<8x128xf32>
    %594 = arith.cmpf ole, %36, %33 : vector<8x128xf32>
    %cst_140 = arith.constant 0.000000e+00 : f32
    %595 = vector.broadcast %cst_5 : f32 to vector<8x128xf32>
    %596 = vector.broadcast %cst_140 : f32 to vector<8x128xf32>
    %597 = arith.select %594, %595, %596 : vector<8x128xi1>, vector<8x128xf32>
    %598 = arith.subf %593, %597 : vector<8x128xf32>
    %599 = arith.cmpf ole, %39, %33 : vector<8x128xf32>
    %cst_141 = arith.constant 0.000000e+00 : f32
    %600 = vector.broadcast %cst_5 : f32 to vector<8x128xf32>
    %601 = vector.broadcast %cst_141 : f32 to vector<8x128xf32>
    %602 = arith.select %599, %600, %601 : vector<8x128xi1>, vector<8x128xf32>
    %603 = arith.subf %598, %602 : vector<8x128xf32>
    %604 = arith.cmpf ole, %42, %33 : vector<8x128xf32>
    %cst_142 = arith.constant 0.000000e+00 : f32
    %605 = vector.broadcast %cst_5 : f32 to vector<8x128xf32>
    %606 = vector.broadcast %cst_142 : f32 to vector<8x128xf32>
    %607 = arith.select %604, %605, %606 : vector<8x128xi1>, vector<8x128xf32>
    %608 = arith.subf %603, %607 : vector<8x128xf32>
    %609 = math.absf %608 : vector<8x128xf32>
    %610 = arith.maximumf %547, %609 : vector<8x128xf32>
    %cst_143 = arith.constant 0.000000e+00 : f32
    %611 = vector.broadcast %cst_143 : f32 to vector<8x128xf32>
    %612 = arith.cmpf ole, %9, %36 : vector<8x128xf32>
    %cst_144 = arith.constant 0.000000e+00 : f32
    %613 = vector.broadcast %cst_4 : f32 to vector<8x128xf32>
    %614 = vector.broadcast %cst_144 : f32 to vector<8x128xf32>
    %615 = arith.select %612, %613, %614 : vector<8x128xi1>, vector<8x128xf32>
    %616 = arith.addf %611, %615 : vector<8x128xf32>
    %617 = arith.cmpf ole, %12, %36 : vector<8x128xf32>
    %cst_145 = arith.constant 0.000000e+00 : f32
    %618 = vector.broadcast %cst_4 : f32 to vector<8x128xf32>
    %619 = vector.broadcast %cst_145 : f32 to vector<8x128xf32>
    %620 = arith.select %617, %618, %619 : vector<8x128xi1>, vector<8x128xf32>
    %621 = arith.addf %616, %620 : vector<8x128xf32>
    %622 = arith.cmpf ole, %15, %36 : vector<8x128xf32>
    %cst_146 = arith.constant 0.000000e+00 : f32
    %623 = vector.broadcast %cst_4 : f32 to vector<8x128xf32>
    %624 = vector.broadcast %cst_146 : f32 to vector<8x128xf32>
    %625 = arith.select %622, %623, %624 : vector<8x128xi1>, vector<8x128xf32>
    %626 = arith.addf %621, %625 : vector<8x128xf32>
    %627 = arith.cmpf ole, %18, %36 : vector<8x128xf32>
    %cst_147 = arith.constant 0.000000e+00 : f32
    %628 = vector.broadcast %cst_4 : f32 to vector<8x128xf32>
    %629 = vector.broadcast %cst_147 : f32 to vector<8x128xf32>
    %630 = arith.select %627, %628, %629 : vector<8x128xi1>, vector<8x128xf32>
    %631 = arith.addf %626, %630 : vector<8x128xf32>
    %632 = arith.cmpf ole, %21, %36 : vector<8x128xf32>
    %cst_148 = arith.constant 0.000000e+00 : f32
    %633 = vector.broadcast %cst_5 : f32 to vector<8x128xf32>
    %634 = vector.broadcast %cst_148 : f32 to vector<8x128xf32>
    %635 = arith.select %632, %633, %634 : vector<8x128xi1>, vector<8x128xf32>
    %636 = arith.subf %631, %635 : vector<8x128xf32>
    %637 = arith.cmpf ole, %24, %36 : vector<8x128xf32>
    %cst_149 = arith.constant 0.000000e+00 : f32
    %638 = vector.broadcast %cst_5 : f32 to vector<8x128xf32>
    %639 = vector.broadcast %cst_149 : f32 to vector<8x128xf32>
    %640 = arith.select %637, %638, %639 : vector<8x128xi1>, vector<8x128xf32>
    %641 = arith.subf %636, %640 : vector<8x128xf32>
    %642 = arith.cmpf ole, %27, %36 : vector<8x128xf32>
    %cst_150 = arith.constant 0.000000e+00 : f32
    %643 = vector.broadcast %cst_5 : f32 to vector<8x128xf32>
    %644 = vector.broadcast %cst_150 : f32 to vector<8x128xf32>
    %645 = arith.select %642, %643, %644 : vector<8x128xi1>, vector<8x128xf32>
    %646 = arith.subf %641, %645 : vector<8x128xf32>
    %647 = arith.cmpf ole, %30, %36 : vector<8x128xf32>
    %cst_151 = arith.constant 0.000000e+00 : f32
    %648 = vector.broadcast %cst_5 : f32 to vector<8x128xf32>
    %649 = vector.broadcast %cst_151 : f32 to vector<8x128xf32>
    %650 = arith.select %647, %648, %649 : vector<8x128xi1>, vector<8x128xf32>
    %651 = arith.subf %646, %650 : vector<8x128xf32>
    %652 = arith.cmpf ole, %33, %36 : vector<8x128xf32>
    %cst_152 = arith.constant 0.000000e+00 : f32
    %653 = vector.broadcast %cst_5 : f32 to vector<8x128xf32>
    %654 = vector.broadcast %cst_152 : f32 to vector<8x128xf32>
    %655 = arith.select %652, %653, %654 : vector<8x128xi1>, vector<8x128xf32>
    %656 = arith.subf %651, %655 : vector<8x128xf32>
    %657 = arith.cmpf ole, %36, %36 : vector<8x128xf32>
    %cst_153 = arith.constant 0.000000e+00 : f32
    %658 = vector.broadcast %cst_5 : f32 to vector<8x128xf32>
    %659 = vector.broadcast %cst_153 : f32 to vector<8x128xf32>
    %660 = arith.select %657, %658, %659 : vector<8x128xi1>, vector<8x128xf32>
    %661 = arith.subf %656, %660 : vector<8x128xf32>
    %662 = arith.cmpf ole, %39, %36 : vector<8x128xf32>
    %cst_154 = arith.constant 0.000000e+00 : f32
    %663 = vector.broadcast %cst_5 : f32 to vector<8x128xf32>
    %664 = vector.broadcast %cst_154 : f32 to vector<8x128xf32>
    %665 = arith.select %662, %663, %664 : vector<8x128xi1>, vector<8x128xf32>
    %666 = arith.subf %661, %665 : vector<8x128xf32>
    %667 = arith.cmpf ole, %42, %36 : vector<8x128xf32>
    %cst_155 = arith.constant 0.000000e+00 : f32
    %668 = vector.broadcast %cst_5 : f32 to vector<8x128xf32>
    %669 = vector.broadcast %cst_155 : f32 to vector<8x128xf32>
    %670 = arith.select %667, %668, %669 : vector<8x128xi1>, vector<8x128xf32>
    %671 = arith.subf %666, %670 : vector<8x128xf32>
    %672 = math.absf %671 : vector<8x128xf32>
    %673 = arith.maximumf %610, %672 : vector<8x128xf32>
    %cst_156 = arith.constant 0.000000e+00 : f32
    %674 = vector.broadcast %cst_156 : f32 to vector<8x128xf32>
    %675 = arith.cmpf ole, %9, %39 : vector<8x128xf32>
    %cst_157 = arith.constant 0.000000e+00 : f32
    %676 = vector.broadcast %cst_4 : f32 to vector<8x128xf32>
    %677 = vector.broadcast %cst_157 : f32 to vector<8x128xf32>
    %678 = arith.select %675, %676, %677 : vector<8x128xi1>, vector<8x128xf32>
    %679 = arith.addf %674, %678 : vector<8x128xf32>
    %680 = arith.cmpf ole, %12, %39 : vector<8x128xf32>
    %cst_158 = arith.constant 0.000000e+00 : f32
    %681 = vector.broadcast %cst_4 : f32 to vector<8x128xf32>
    %682 = vector.broadcast %cst_158 : f32 to vector<8x128xf32>
    %683 = arith.select %680, %681, %682 : vector<8x128xi1>, vector<8x128xf32>
    %684 = arith.addf %679, %683 : vector<8x128xf32>
    %685 = arith.cmpf ole, %15, %39 : vector<8x128xf32>
    %cst_159 = arith.constant 0.000000e+00 : f32
    %686 = vector.broadcast %cst_4 : f32 to vector<8x128xf32>
    %687 = vector.broadcast %cst_159 : f32 to vector<8x128xf32>
    %688 = arith.select %685, %686, %687 : vector<8x128xi1>, vector<8x128xf32>
    %689 = arith.addf %684, %688 : vector<8x128xf32>
    %690 = arith.cmpf ole, %18, %39 : vector<8x128xf32>
    %cst_160 = arith.constant 0.000000e+00 : f32
    %691 = vector.broadcast %cst_4 : f32 to vector<8x128xf32>
    %692 = vector.broadcast %cst_160 : f32 to vector<8x128xf32>
    %693 = arith.select %690, %691, %692 : vector<8x128xi1>, vector<8x128xf32>
    %694 = arith.addf %689, %693 : vector<8x128xf32>
    %695 = arith.cmpf ole, %21, %39 : vector<8x128xf32>
    %cst_161 = arith.constant 0.000000e+00 : f32
    %696 = vector.broadcast %cst_5 : f32 to vector<8x128xf32>
    %697 = vector.broadcast %cst_161 : f32 to vector<8x128xf32>
    %698 = arith.select %695, %696, %697 : vector<8x128xi1>, vector<8x128xf32>
    %699 = arith.subf %694, %698 : vector<8x128xf32>
    %700 = arith.cmpf ole, %24, %39 : vector<8x128xf32>
    %cst_162 = arith.constant 0.000000e+00 : f32
    %701 = vector.broadcast %cst_5 : f32 to vector<8x128xf32>
    %702 = vector.broadcast %cst_162 : f32 to vector<8x128xf32>
    %703 = arith.select %700, %701, %702 : vector<8x128xi1>, vector<8x128xf32>
    %704 = arith.subf %699, %703 : vector<8x128xf32>
    %705 = arith.cmpf ole, %27, %39 : vector<8x128xf32>
    %cst_163 = arith.constant 0.000000e+00 : f32
    %706 = vector.broadcast %cst_5 : f32 to vector<8x128xf32>
    %707 = vector.broadcast %cst_163 : f32 to vector<8x128xf32>
    %708 = arith.select %705, %706, %707 : vector<8x128xi1>, vector<8x128xf32>
    %709 = arith.subf %704, %708 : vector<8x128xf32>
    %710 = arith.cmpf ole, %30, %39 : vector<8x128xf32>
    %cst_164 = arith.constant 0.000000e+00 : f32
    %711 = vector.broadcast %cst_5 : f32 to vector<8x128xf32>
    %712 = vector.broadcast %cst_164 : f32 to vector<8x128xf32>
    %713 = arith.select %710, %711, %712 : vector<8x128xi1>, vector<8x128xf32>
    %714 = arith.subf %709, %713 : vector<8x128xf32>
    %715 = arith.cmpf ole, %33, %39 : vector<8x128xf32>
    %cst_165 = arith.constant 0.000000e+00 : f32
    %716 = vector.broadcast %cst_5 : f32 to vector<8x128xf32>
    %717 = vector.broadcast %cst_165 : f32 to vector<8x128xf32>
    %718 = arith.select %715, %716, %717 : vector<8x128xi1>, vector<8x128xf32>
    %719 = arith.subf %714, %718 : vector<8x128xf32>
    %720 = arith.cmpf ole, %36, %39 : vector<8x128xf32>
    %cst_166 = arith.constant 0.000000e+00 : f32
    %721 = vector.broadcast %cst_5 : f32 to vector<8x128xf32>
    %722 = vector.broadcast %cst_166 : f32 to vector<8x128xf32>
    %723 = arith.select %720, %721, %722 : vector<8x128xi1>, vector<8x128xf32>
    %724 = arith.subf %719, %723 : vector<8x128xf32>
    %725 = arith.cmpf ole, %39, %39 : vector<8x128xf32>
    %cst_167 = arith.constant 0.000000e+00 : f32
    %726 = vector.broadcast %cst_5 : f32 to vector<8x128xf32>
    %727 = vector.broadcast %cst_167 : f32 to vector<8x128xf32>
    %728 = arith.select %725, %726, %727 : vector<8x128xi1>, vector<8x128xf32>
    %729 = arith.subf %724, %728 : vector<8x128xf32>
    %730 = arith.cmpf ole, %42, %39 : vector<8x128xf32>
    %cst_168 = arith.constant 0.000000e+00 : f32
    %731 = vector.broadcast %cst_5 : f32 to vector<8x128xf32>
    %732 = vector.broadcast %cst_168 : f32 to vector<8x128xf32>
    %733 = arith.select %730, %731, %732 : vector<8x128xi1>, vector<8x128xf32>
    %734 = arith.subf %729, %733 : vector<8x128xf32>
    %735 = math.absf %734 : vector<8x128xf32>
    %736 = arith.maximumf %673, %735 : vector<8x128xf32>
    %cst_169 = arith.constant 0.000000e+00 : f32
    %737 = vector.broadcast %cst_169 : f32 to vector<8x128xf32>
    %738 = arith.cmpf ole, %9, %42 : vector<8x128xf32>
    %cst_170 = arith.constant 0.000000e+00 : f32
    %739 = vector.broadcast %cst_4 : f32 to vector<8x128xf32>
    %740 = vector.broadcast %cst_170 : f32 to vector<8x128xf32>
    %741 = arith.select %738, %739, %740 : vector<8x128xi1>, vector<8x128xf32>
    %742 = arith.addf %737, %741 : vector<8x128xf32>
    %743 = arith.cmpf ole, %12, %42 : vector<8x128xf32>
    %cst_171 = arith.constant 0.000000e+00 : f32
    %744 = vector.broadcast %cst_4 : f32 to vector<8x128xf32>
    %745 = vector.broadcast %cst_171 : f32 to vector<8x128xf32>
    %746 = arith.select %743, %744, %745 : vector<8x128xi1>, vector<8x128xf32>
    %747 = arith.addf %742, %746 : vector<8x128xf32>
    %748 = arith.cmpf ole, %15, %42 : vector<8x128xf32>
    %cst_172 = arith.constant 0.000000e+00 : f32
    %749 = vector.broadcast %cst_4 : f32 to vector<8x128xf32>
    %750 = vector.broadcast %cst_172 : f32 to vector<8x128xf32>
    %751 = arith.select %748, %749, %750 : vector<8x128xi1>, vector<8x128xf32>
    %752 = arith.addf %747, %751 : vector<8x128xf32>
    %753 = arith.cmpf ole, %18, %42 : vector<8x128xf32>
    %cst_173 = arith.constant 0.000000e+00 : f32
    %754 = vector.broadcast %cst_4 : f32 to vector<8x128xf32>
    %755 = vector.broadcast %cst_173 : f32 to vector<8x128xf32>
    %756 = arith.select %753, %754, %755 : vector<8x128xi1>, vector<8x128xf32>
    %757 = arith.addf %752, %756 : vector<8x128xf32>
    %758 = arith.cmpf ole, %21, %42 : vector<8x128xf32>
    %cst_174 = arith.constant 0.000000e+00 : f32
    %759 = vector.broadcast %cst_5 : f32 to vector<8x128xf32>
    %760 = vector.broadcast %cst_174 : f32 to vector<8x128xf32>
    %761 = arith.select %758, %759, %760 : vector<8x128xi1>, vector<8x128xf32>
    %762 = arith.subf %757, %761 : vector<8x128xf32>
    %763 = arith.cmpf ole, %24, %42 : vector<8x128xf32>
    %cst_175 = arith.constant 0.000000e+00 : f32
    %764 = vector.broadcast %cst_5 : f32 to vector<8x128xf32>
    %765 = vector.broadcast %cst_175 : f32 to vector<8x128xf32>
    %766 = arith.select %763, %764, %765 : vector<8x128xi1>, vector<8x128xf32>
    %767 = arith.subf %762, %766 : vector<8x128xf32>
    %768 = arith.cmpf ole, %27, %42 : vector<8x128xf32>
    %cst_176 = arith.constant 0.000000e+00 : f32
    %769 = vector.broadcast %cst_5 : f32 to vector<8x128xf32>
    %770 = vector.broadcast %cst_176 : f32 to vector<8x128xf32>
    %771 = arith.select %768, %769, %770 : vector<8x128xi1>, vector<8x128xf32>
    %772 = arith.subf %767, %771 : vector<8x128xf32>
    %773 = arith.cmpf ole, %30, %42 : vector<8x128xf32>
    %cst_177 = arith.constant 0.000000e+00 : f32
    %774 = vector.broadcast %cst_5 : f32 to vector<8x128xf32>
    %775 = vector.broadcast %cst_177 : f32 to vector<8x128xf32>
    %776 = arith.select %773, %774, %775 : vector<8x128xi1>, vector<8x128xf32>
    %777 = arith.subf %772, %776 : vector<8x128xf32>
    %778 = arith.cmpf ole, %33, %42 : vector<8x128xf32>
    %cst_178 = arith.constant 0.000000e+00 : f32
    %779 = vector.broadcast %cst_5 : f32 to vector<8x128xf32>
    %780 = vector.broadcast %cst_178 : f32 to vector<8x128xf32>
    %781 = arith.select %778, %779, %780 : vector<8x128xi1>, vector<8x128xf32>
    %782 = arith.subf %777, %781 : vector<8x128xf32>
    %783 = arith.cmpf ole, %36, %42 : vector<8x128xf32>
    %cst_179 = arith.constant 0.000000e+00 : f32
    %784 = vector.broadcast %cst_5 : f32 to vector<8x128xf32>
    %785 = vector.broadcast %cst_179 : f32 to vector<8x128xf32>
    %786 = arith.select %783, %784, %785 : vector<8x128xi1>, vector<8x128xf32>
    %787 = arith.subf %782, %786 : vector<8x128xf32>
    %788 = arith.cmpf ole, %39, %42 : vector<8x128xf32>
    %cst_180 = arith.constant 0.000000e+00 : f32
    %789 = vector.broadcast %cst_5 : f32 to vector<8x128xf32>
    %790 = vector.broadcast %cst_180 : f32 to vector<8x128xf32>
    %791 = arith.select %788, %789, %790 : vector<8x128xi1>, vector<8x128xf32>
    %792 = arith.subf %787, %791 : vector<8x128xf32>
    %793 = arith.cmpf ole, %42, %42 : vector<8x128xf32>
    %cst_181 = arith.constant 0.000000e+00 : f32
    %794 = vector.broadcast %cst_5 : f32 to vector<8x128xf32>
    %795 = vector.broadcast %cst_181 : f32 to vector<8x128xf32>
    %796 = arith.select %793, %794, %795 : vector<8x128xi1>, vector<8x128xf32>
    %797 = arith.subf %792, %796 : vector<8x128xf32>
    %798 = math.absf %797 : vector<8x128xf32>
    %799 = arith.maximumf %736, %798 : vector<8x128xf32>
    %800 = vector.broadcast %cst_6 : f32 to vector<8x128xf32>
    %801 = arith.mulf %799, %800 : vector<8x128xf32>
    %802 = vector.broadcast %2 : f32 to vector<8x128xf32>
    %803 = arith.mulf %802, %801 : vector<8x128xf32>
    %804 = arith.mulf %803, %801 : vector<8x128xf32>
    %cst_182 = arith.constant -2.000000e+00 : f32
    %805 = vector.broadcast %cst_182 : f32 to vector<8x128xf32>
    %806 = arith.mulf %805, %804 : vector<8x128xf32>
    %807 = math.exp %806 : vector<8x128xf32>
    %808 = arith.mulf %807, %807 : vector<8x128xf32>
    %809 = arith.mulf %808, %807 : vector<8x128xf32>
    %810 = arith.mulf %807, %809 : vector<8x128xf32>
    %811 = arith.mulf %809, %808 : vector<8x128xf32>
    %812 = arith.subf %807, %810 : vector<8x128xf32>
    %813 = arith.mulf %810, %811 : vector<8x128xf32>
    %814 = arith.mulf %811, %808 : vector<8x128xf32>
    %815 = arith.addf %812, %813 : vector<8x128xf32>
    %816 = arith.mulf %813, %814 : vector<8x128xf32>
    %817 = arith.mulf %814, %808 : vector<8x128xf32>
    %818 = arith.subf %815, %816 : vector<8x128xf32>
    %819 = arith.mulf %816, %817 : vector<8x128xf32>
    %820 = arith.mulf %817, %808 : vector<8x128xf32>
    %821 = arith.addf %818, %819 : vector<8x128xf32>
    %822 = arith.mulf %819, %820 : vector<8x128xf32>
    %823 = arith.mulf %820, %808 : vector<8x128xf32>
    %824 = arith.subf %821, %822 : vector<8x128xf32>
    %825 = arith.mulf %822, %823 : vector<8x128xf32>
    %826 = arith.mulf %823, %808 : vector<8x128xf32>
    %827 = arith.addf %824, %825 : vector<8x128xf32>
    %828 = arith.mulf %825, %826 : vector<8x128xf32>
    %829 = arith.subf %827, %828 : vector<8x128xf32>
    %cst_183 = arith.constant 2.000000e+00 : f32
    %830 = vector.broadcast %cst_183 : f32 to vector<8x128xf32>
    %831 = arith.mulf %830, %829 : vector<8x128xf32>
    %cst_184 = arith.constant 0.000000e+00 : f32
    %832 = vector.broadcast %cst_184 : f32 to vector<8x128xf32>
    %833 = arith.cmpf ole, %801, %832 : vector<8x128xf32>
    %cst_185 = arith.constant 0.000000e+00 : f32
    %cst_186 = arith.constant 1.000000e+00 : f32
    %834 = vector.broadcast %cst_185 : f32 to vector<8x128xf32>
    %835 = arith.maximumf %834, %831 : vector<8x128xf32>
    %836 = vector.broadcast %cst_186 : f32 to vector<8x128xf32>
    %837 = arith.minimumf %836, %835 : vector<8x128xf32>
    %cst_187 = arith.constant 1.000000e+00 : f32
    %838 = vector.broadcast %cst_187 : f32 to vector<8x128xf32>
    %839 = arith.select %833, %838, %837 : vector<8x128xi1>, vector<8x128xf32>
    %840 = vector.shape_cast %0 : vector<4x8xf32> to vector<4x8x1xf32>
    %841 = vector.shape_cast %839 : vector<8x128xf32> to vector<1x8x128xf32>
    %842 = vector.broadcast %840 : vector<4x8x1xf32> to vector<4x8x128xf32>
    %843 = vector.broadcast %841 : vector<1x8x128xf32> to vector<4x8x128xf32>
    %844 = arith.mulf %842, %843 : vector<4x8x128xf32>
    %cst_188 = arith.constant dense<0.000000e+00> : vector<4x128xf32>
    %845 = vector.multi_reduction <add>, %844, %cst_188 [1] : vector<4x8x128xf32> to vector<4x128xf32>
    %846 = vector.broadcast %1 : vector<4x1xf32> to vector<4x128xf32>
    %847 = arith.addf %845, %846 : vector<4x128xf32>
    %cst_189 = arith.constant 0.000000e+00 : f32
    %848 = vector.broadcast %cst_189 : f32 to vector<4x128xf32>
    %849 = arith.cmpf oge, %847, %848 : vector<4x128xf32>
    %cst_190 = arith.constant 0.00999999977 : f32
    %850 = vector.broadcast %cst_190 : f32 to vector<4x128xf32>
    %851 = arith.mulf %850, %847 : vector<4x128xf32>
    %852 = arith.select %849, %847, %851 : vector<4x128xi1>, vector<4x128xf32>
    %c0_191 = arith.constant 0 : index
    %853 = arith.index_cast %6 : i32 to index
    %854 = vector.load %arg5[%c0_191, %853] : memref<4x128xf32, #tpu.memory_space<vmem>>, vector<4x128xf32>
    tpu.vector_store %arg5[%c0_191, %853], %852 {strides = array<i32>} : memref<4x128xf32, #tpu.memory_space<vmem>>, vector<4x128xf32>,
    %c1_i32_192 = arith.constant 1 : i32
    return
  }
  func.func @transform_0(%arg0: i32) -> (i32, i32, i32) {
    %c0_i32 = arith.constant 0 : i32
    %c0_i32_0 = arith.constant 0 : i32
    %c0_i32_1 = arith.constant 0 : i32
    return %c0_i32, %c0_i32_0, %arg0 : i32, i32, i32
  }
  func.func @transform_1(%arg0: i32) -> (i32, i32, i32) {
    %c0_i32 = arith.constant 0 : i32
    %c0_i32_0 = arith.constant 0 : i32
    %c0_i32_1 = arith.constant 0 : i32
    return %c0_i32, %c0_i32_0, %arg0 : i32, i32, i32
  }
  func.func @transform_2(%arg0: i32) -> (i32, i32) {
    %c0_i32 = arith.constant 0 : i32
    %c0_i32_0 = arith.constant 0 : i32
    %c0_i32_1 = arith.constant 0 : i32
    return %c0_i32, %c0_i32_0 : i32, i32
  }
  func.func @transform_3(%arg0: i32) -> (i32, i32) {
    %c0_i32 = arith.constant 0 : i32
    %c0_i32_0 = arith.constant 0 : i32
    %c0_i32_1 = arith.constant 0 : i32
    return %c0_i32, %c0_i32_0 : i32, i32
  }
  func.func @transform_4(%arg0: i32) -> (i32, i32) {
    %c0_i32 = arith.constant 0 : i32
    %c0_i32_0 = arith.constant 0 : i32
    return %c0_i32, %arg0 : i32, i32
  }
}

</mosaic_0001>

<bundles_post_ra>
// kernel: tpu_custom_call.1
= control target key start
LH: loop header
LB: loop body
LE: loop exit
PB: predicated region body
PF: predicated region fallthrough
CT: control target
= control target key end

     0   :  { %s1959_s0 = inlined_call_operand.hbm [shape: f32[4,8,256], index: 0, kind: input, shape index: {}]   ;;  %s1960_s1 = inlined_call_operand.hbm [shape: f32[8,8,256], index: 1, kind: input, shape index: {}]   ;;  %s1961_s2 = inlined_call_operand.vmem [shape: f32[4,8], index: 2, kind: input, shape index: {}]   ;;  %s1962_s3 = inlined_call_operand.vmem [shape: f32[4,1], index: 3, kind: input, shape index: {}]   ;;  %s1963_s4 = inlined_call_operand.hbm [shape: f32[4,256], index: 4, kind: output, shape index: {}]  }
   0x1   :  { %1965 = sst [smem:[#allocation13_spill]] %s1959_s0 }
   0x2   :  { %9 = vsyncpa [#allocation3], 0 }
   0x3   :  { %11 = vsyncpa [#allocation3 + $0x1], 0 }
   0x4   :  { %12 = vsyncpa [#allocation6], 0 }
   0x5   :  { %14 = vsyncpa [#allocation6 + $0x1], 0 }
   0x6   :  { %15 = vsyncpa [#allocation4], 0 }
   0x7   :  { %17 = vsyncpa [#allocation4 + $0x1], 0  ;;  %s1244_s15 = smov 0   ;;  %s1246_s16 = smov 0  }
   0x8   :  { %s1248_s17 = smov 0   ;;  %s1250_s18 = smov 0  }
   0x9 LB: > { %1966 = sst [smem:[#allocation11_spill]] %s1208_s17  ;;  %s1265_s19 = sadd.s32 4294967295, %s1212_s18   ;;  %s1212_s18 = sphi %s1250_s18, %s1979_s18   ;;  %s1208_s17 = sphi %s1248_s17, %s1976_s17   ;;  %s1204_s16 = sphi %s1246_s16, %s1978_s16   ;;  %s1200_s15 = sphi %s1244_s15, %s1977_s15  }
   0xa   : > { %s995_s20 = sadd.s32 4294967294, %s1212_s18   ;;  %s1269_s21 = sadd.s32 1, %s1212_s18  }
   0xb   : > { %s30_s22 = sadd.s32 1, %s1208_s17  ;;  %s27_s23 = ssub.s32 %s1212_s18, %s1269_s21 }
   0xc   : > { %p37_p0 = scmp.ne.s32.totalorder %s1208_s17, %s1204_s16  ;;  %p28_p1 = scmp.eq.s32.totalorder %s27_s23, 0 }
   0xd   : > { %p38_p2 = scmp.eq.s32.totalorder %s1212_s18, 0  ;;  %p43_p3 = scmp.ne.s32.totalorder %s1204_s16, %s1200_s15 }
   0xe   : > { %p44_p4 = scmp.eq.s32.totalorder %s1265_s19, 0  ;;  %p135_p7 = scmp.eq.s32.totalorder %s1265_s19, 1 }
   0xf   : > { %s1281_s24 = scalar_select %p28_p1, %s1208_s17, %s30_s22  }
  0x10   : > { %p1283_p5 = por %p38_p2, %p37_p0  ;;  %p1287_p6 = por %p44_p4, %p43_p3 }
  0x11   : > { %1967 = sst [smem:[#allocation12_spill]] %s1281_s24  ;;  %p141_p8 = scmp.eq.s32.totalorder %s995_s20, 1 }
  0x12   : > { %p997_p9 = scmp.ge.s32.totalorder %s1212_s18, 2  ;;  %p1037_p10 = scmp.lt.s32.totalorder %s1212_s18, 2 }
  0x13   : > { %p1294_p11 = por %p135_p7, %p37_p0  ;;  %p1298_p12 = por %p141_p8, %p43_p3 }
  0x14   : > { %s1303_s29 = sand.u32 1, %s1208_s17   ;;  %s999_s30 = sshll.u32 %s1212_s18, 3 }
  0x15   : > { %s998_s5 = sshll.u32 %s1303_s29, 5  ;;  %s1972_s0 = sld [smem:[#allocation13_spill]] }
  0x16   : > { %s171_s10 = scalar_lea.vmem [#allocation2], %s998_s5  ;;  %p1314_p13 = pnand %p1037_p10, %p1283_p5 }
  0x17   : > { %s178_s11 = sshll.u32 %s171_s10, 4  ;;  %p1002_p0 = scmp.ge.s32.totalorder %s1212_s18, 1  ;;  %s179_s11 = int_to_ptr.vmem [resolvable:$true] %s178_s11 }
  0x18   : > { %s168_s13 = scalar_lea.sflag [#allocation3], %s1303_s29  ;;  %p1086_p2 = pneg %p1314_p13 }
  0x1b   : > { %s175_s8 = scalar_lea.hbm %s1972_s0, %s999_s30  ;;  %s1089_s25 = scalar_lea.hbm %s1972_s0, 64 }
  0x1c   : > { %s176_s9 = sshll.u32 %s175_s8, 4  ;;  %s177_s9 = int_to_ptr.hbm [resolvable:$true] %s176_s9 }
  0x1d   : > { %s1082_s14 = sshra.s32 %s177_s9, 4  ;;  %s1083_s14 = int_to_ptr.hbm [resolvable:$true] %s1082_s14 }
  0x1e   : > { %s1084_s20 = scalar_lea.hbm %s1083_s14, 32  ;;  %p1090_p5 = scmp.lt.s32.totalorder %s1083_s14, %s1972_s0 }
  0x1f   : > { %p1085_p1 = scmp.ne.s32.totalorder %s1083_s14, %s1084_s20  ;;  %p1091_p7 = scmp.lt.s32.totalorder %s1089_s25, %s1084_s20 }
  0x21   : > { %p1087_p3 = pnand %p1086_p2, %p1085_p1  ;;  %p1092_p8 = por %p1091_p7, %p1090_p5 }
  0x23   : > { %p1088_p4 = pneg %p1087_p3 }
  0x25   : > { %p1093_p10 = pnand %p1092_p8, %p1088_p4 }
  0x27   : > { %1096 = shalt.err (!%p1093_p10)
}
  0x28   : > { %s1214_s7 = smov 256   ;;  %s1215_s8 = smov 128  }
  0x29   : > { %s1216_s10 = smov 8   ;;  %p207_p1 = scmp.lt.s32.totalorder %s1212_s18, 3 }
  0x2a   : > { %1029 = dma.hbm_to_vmem [thread:$0]  (!%p1314_p13), %s177_s9, 512, %s179_s11, %s168_s13, %s1214_s7, %s1215_s8, %s1216_s10  }
  0x2b   : > { %s1000_s14 = sshll.u32 %s1303_s29, 6  ;;  %s196_s23 = scalar_lea.hbm %s1960_s1, %s999_s30 }
  0x2c   : > { %p1344_p3 = pnand %p1002_p0, %p207_p1  ;;  %s197_s5 = sshll.u32 %s196_s23, 4  ;;  %s198_s5 = int_to_ptr.hbm [resolvable:$true] %s197_s5 }
  0x2d   : > { %s192_s6 = scalar_lea.vmem [#allocation5], %s1000_s14  ;;  %s189_s24 = scalar_lea.sflag [#allocation6], %s1303_s29 }
  0x2e   : > { %s199_s0 = sshll.u32 %s192_s6, 4  ;;  %s1112_s17 = sshra.s32 %s198_s5, 4  ;;  %s200_s0 = int_to_ptr.vmem [resolvable:$true] %s199_s0  ;;  %s1113_s17 = int_to_ptr.hbm [resolvable:$true] %s1112_s17 }
  0x2f   : > { %s1114_s9 = scalar_lea.hbm %s1113_s17, 64  ;;  %s1119_s13 = scalar_lea.hbm %s1960_s1, 128 }
  0x30   : > { %p1115_p4 = scmp.ne.s32.totalorder %s1113_s17, %s1114_s9  ;;  %p1120_p0 = scmp.lt.s32.totalorder %s1113_s17, %s1960_s1 }
  0x31   : > { %p1121_p8 = scmp.lt.s32.totalorder %s1119_s13, %s1114_s9 }
  0x32   : > { %p1117_p5 = pnand %p1115_p4, %p1086_p2 }
  0x33   : > { %p1122_p10 = por %p1121_p8, %p1120_p0 }
  0x34   : > { %p1118_p7 = pneg %p1117_p5 }
  0x36   : > { %p1123_p1 = pnand %p1122_p10, %p1118_p7 }
  0x38   : > { %1126 = shalt.err (!%p1123_p1)
}
  0x39   : > { %1032 = dma.hbm_to_vmem [thread:$0]  (!%p1314_p13), %s198_s5, 1024, %s200_s0, %s189_s24, %s1214_s7, %s1215_s8, %s1216_s10  }
  0x3a   : > { %211 = sbr.rel (%p1344_p3) target bundleno = 264 (0x108), region = 36  ;;  %s1365_s29 = sand.u32 (!%p1344_p3), 1, %s1204_s16  }
  0x3b   : > { %s1003_s14 = sshll.u32 (!%p1344_p3), %s1365_s29, 5  ;;  %s214_s17 = scalar_lea.sflag (!%p1344_p3), [#allocation3], %s1365_s29 }
  0x3c   : > { %s217_s23 = scalar_lea.vmem (!%p1344_p3), [#allocation2], %s1003_s14 }
  0x3f   : > { %1187 = dma.done.wait (%p1287_p6), %s214_s17, 512  }
  0x40   : > { %1189 = vsyncadd (%p1287_p6), %s214_s17, 4294966784  ;;  %s1004_s0 = sshll.u32 %s1365_s29, 6  ;;  %s224_s24 = scalar_lea.sflag [#allocation6], %s1365_s29 }
  0x41   : > { %s1375_s12 = scalar_lea.vmem [#allocation5], %s1004_s0 }
  0x42   : > { %1191 = dma.done.wait (%p1287_p6), %s224_s24, 1024  }
  0x43   : > { %1193 = vsyncadd (%p1287_p6), %s224_s24, 4294966272  ;;  %v779_v0 = vlaneseq  ;;  %v1217_v1 = vmov 0   ;;  %v258_v3 = vld [vmem:[%s1961_s2] sm:$0xf]  ;;  %v1390_v8 = vld [vmem:[%s217_s23 + $0x8] sm:$0xff]  ;;  %v1218_v14 = vmov 0.0  }
  0x44   : > { %1078 = vset.pattern.permute.xlu2 %v1217_v1  ;;  %v259_v4 = vld [vmem:[%s1962_s3] sm:$0xf]  ;;  %v785_v6 = vperm.slane %v258_v3, 1  ;;  %v778_v7 = vperm.slane %v258_v3, 0  ;;  %v1392_v9 = vld [vmem:[%s217_s23 + $0x10] sm:$0xff]  ;;  %v1394_v10 = vld [vmem:[%s217_s23 + $0x18] sm:$0xff]  ;;  %vm330_vm10 = vcmp.le.f32.partialorder %v1390_v8, %v1390_v8 }
  0x45   : > { %v780_v2 = vshrl.u32 %v779_v0, 7  ;;  %v1388_v5 = vld [vmem:[%s217_s23] sm:$0xff]  ;;  %836 = vperm.xlu2 %1078, %v259_v4   ;;  %v1400_v12 = vld [vmem:[%s1375_s12 + $0x8] sm:$0xff]  ;;  %v1409_v13 = vld [vmem:[%s1375_s12 + $0x10] sm:$0xff]  ;;  %v792_v23 = vperm.slane %v258_v3, 2  ;;  %v799_v24 = vperm.slane %v258_v3, 3  ;;  %vm333_vm11 = vcmp.le.f32.partialorder %v1392_v9, %v1390_v8 }
  0x46   : > { %v1397_v11 = vld [vmem:[%s1375_s12] sm:$0xff]  ;;  %vm289_vm0 = vcmp.le.f32.partialorder %v1388_v5, %v1388_v5  ;;  %vm292_vm1 = vcmp.le.f32.partialorder %v1390_v8, %v1388_v5  ;;  %vm295_vm2 = vcmp.le.f32.partialorder %v1392_v9, %v1388_v5  ;;  %vm298_vm3 = vcmp.le.f32.partialorder %v1394_v10, %v1388_v5  ;;  %v1421_v19 = vld [vmem:[%s1375_s12 + $0x18] sm:$0xff]  ;;  %v1432_v25 = vld [vmem:[%s1375_s12 + $0x28] sm:$0xff]  ;;  %s1005_s26 = sshll.u32 %s1365_s29, 2  ;;  %s1017_s5 = sshll.u32 %s1265_s19, 2 }
  0x47   : > { %1077 = vset.pattern.permute.xlu1 %v780_v2  ;;  %1076 = vset.pattern.permute.xlu0 %v780_v2  ;;  %v290_v15 = vsel %vm289_vm0, 8.0, %v1218_v14  ;;  %v293_v16 = vsel %vm292_vm1, 8.0, %v1218_v14  ;;  %v296_v17 = vsel %vm295_vm2, 8.0, %v1218_v14  ;;  %vm301_vm4 = vcmp.le.f32.partialorder %v1397_v11, %v1388_v5  ;;  %v1424_v20 = vld [vmem:[%s1375_s12 + $0x20] sm:$0xff]  ;;  %v1437_v28 = vld [vmem:[%s1375_s12 + $0x30] sm:$0xff]  ;;  %v1440_v29 = vld [vmem:[%s1375_s12 + $0x38] sm:$0xff]  ;;  %s887_s30 = scalar_lea.hbm %s1963_s4, %s1017_s5 }
  0x48   : > { %v294_v18 = vadd.f32 %v293_v16, %v290_v15  ;;  %vm304_vm5 = vcmp.le.f32.partialorder %v1400_v12, %v1388_v5  ;;  %v299_v21 = vsel %vm298_vm3, 8.0, %v1218_v14  ;;  %vm307_vm6 = vcmp.le.f32.partialorder %v1409_v13, %v1388_v5  ;;  %s257_s19 = scalar_lea.vmem [#allocation7], %s1005_s26  ;;  %s891_s13 = sshll.u32 %s887_s30, 4  ;;  %s892_s13 = int_to_ptr.hbm [resolvable:$true] %s891_s13 }
  0x49   : > { %vm327_vm7 = vcmp.le.f32.partialorder %v1388_v5, %v1390_v8  ;;  %v302_v26 = vsel %vm301_vm4, 4.0, %v1218_v14  ;;  %v305_v27 = vsel %vm304_vm5, 4.0, %v1218_v14  ;;  %v308_v31 = vsel %vm307_vm6, 4.0, %v1218_v14  ;;  %s889_s11 = sshll.u32 %s257_s19, 4  ;;  %s877_s20 = scalar_lea.sflag [#allocation4], %s1365_s29  ;;  %s890_s11 = int_to_ptr.vmem [resolvable:$true] %s889_s11 }
  0x4a   : > { %v297_v22 = vadd.f32 %v296_v17, %v294_v18  ;;  %vm310_vm8 = vcmp.le.f32.partialorder %v1421_v19, %v1388_v5  ;;  %vm313_vm9 = vcmp.le.f32.partialorder %v1424_v20, %v1388_v5  ;;  %v328_v32 = vsel %vm327_vm7, 8.0, %v1218_v14  ;;  %s1156_s22 = sshra.s32 %s892_s13, 4  ;;  %s1162_s0 = scalar_lea.hbm %s1963_s4, 8  ;;  %s1157_s22 = int_to_ptr.hbm [resolvable:$true] %s1156_s22 }
  0x4b   : > { %vm336_vm12 = vcmp.le.f32.partialorder %v1394_v10, %v1390_v8  ;;  %vm316_vm13 = vcmp.le.f32.partialorder %v1432_v25, %v1388_v5  ;;  %v331_v34 = vsel %vm330_vm10, 8.0, %v1218_v14  ;;  %v334_v35 = vsel %vm333_vm11, 8.0, %v1218_v14  ;;  %s1158_s14 = scalar_lea.hbm %s1157_s22, 4  ;;  %p1163_p3 = scmp.lt.s32.totalorder %s1157_s22, %s1963_s4 }
  0x4c   : > { %v300_v30 = vadd.f32 %v299_v21, %v297_v22  ;;  %vm319_vm14 = vcmp.le.f32.partialorder %v1437_v28, %v1388_v5  ;;  %vm322_vm15 = vcmp.le.f32.partialorder %v1440_v29, %v1388_v5  ;;  %v332_v36 = vadd.f32 %v331_v34, %v328_v32  ;;  %p1159_p6 = scmp.ne.s32.totalorder %s1157_s22, %s1158_s14  ;;  %p1164_p4 = scmp.lt.s32.totalorder %s1162_s0, %s1158_s14 }
  0x4d   : > { %vm339_vm0 = vcmp.le.f32.partialorder %v1397_v11, %v1390_v8  ;;  %v337_v38 = vsel %vm336_vm12, 8.0, %v1218_v14  ;;  %vm342_vm1 = vcmp.le.f32.partialorder %v1400_v12, %v1390_v8  ;;  %vm345_vm2 = vcmp.le.f32.partialorder %v1409_v13, %v1390_v8 }
  0x4e   : > { %v303_v33 = vsub.f32 %v300_v30, %v302_v26  ;;  %v311_v39 = vsel %vm310_vm8, 4.0, %v1218_v14  ;;  %v314_v40 = vsel %vm313_vm9, 4.0, %v1218_v14  ;;  %v335_v41 = vadd.f32 %v334_v35, %v332_v36  ;;  %p1160_p13 = pnand %p1159_p6, %p1294_p11  ;;  %p1165_p5 = por %p1164_p4, %p1163_p3 }
  0x4f   : > { %790 = vperm.xlu0 %1076, %v785_v6   ;;  %783 = vperm.xlu1 %1077, %v778_v7   ;;  %vm348_vm3 = vcmp.le.f32.partialorder %v1421_v19, %v1390_v8  ;;  %v317_v43 = vsel %vm316_vm13, 4.0, %v1218_v14  ;;  %v320_v44 = vsel %vm319_vm14, 4.0, %v1218_v14  ;;  %v340_v45 = vsel %vm339_vm0, 4.0, %v1218_v14 }
  0x50   : > { %v306_v37 = vsub.f32 %v303_v33, %v305_v27  ;;  %v323_v46 = vsel %vm322_vm15, 4.0, %v1218_v14  ;;  %v338_v47 = vadd.f32 %v337_v38, %v335_v41  ;;  %v343_v48 = vsel %vm342_vm1, 4.0, %v1218_v14  ;;  %p1161_p2 = pneg %p1160_p13 }
  0x51   : > { %v346_v49 = vsel %vm345_vm2, 4.0, %v1218_v14  ;;  %v349_v51 = vsel %vm348_vm3, 4.0, %v1218_v14  ;;  %vm351_vm4 = vcmp.le.f32.partialorder %v1424_v20, %v1390_v8  ;;  %vm365_vm5 = vcmp.le.f32.partialorder %v1388_v5, %v1392_v9 }
  0x52   : > { %v309_v42 = vsub.f32 %v306_v37, %v308_v31  ;;  %v341_v52 = vsub.f32 %v338_v47, %v340_v45  ;;  %v366_v53 = vsel %vm365_vm5, 8.0, %v1218_v14  ;;  %vm368_vm6 = vcmp.le.f32.partialorder %v1390_v8, %v1392_v9  ;;  %p1166_p7 = pnand %p1165_p5, %p1161_p2 }
  0x53   : > { %vm371_vm7 = vcmp.le.f32.partialorder %v1392_v9, %v1392_v9  ;;  %v369_v55 = vsel %vm368_vm6, 8.0, %v1218_v14  ;;  %vm374_vm8 = vcmp.le.f32.partialorder %v1394_v10, %v1392_v9  ;;  %v352_v58 = vsel %vm351_vm4, 4.0, %v1218_v14 }
  0x54   : > { %v312_v50 = vsub.f32 %v309_v42, %v311_v39  ;;  %v372_v56 = vsel %vm371_vm7, 8.0, %v1218_v14  ;;  %v344_v57 = vsub.f32 %v341_v52, %v343_v48  ;;  %v370_v59 = vadd.f32 %v369_v55, %v366_v53 }
  0x55   : > { %vm377_vm9 = vcmp.le.f32.partialorder %v1397_v11, %v1392_v9  ;;  %vm354_vm10 = vcmp.le.f32.partialorder %v1432_v25, %v1390_v8  ;;  %vm357_vm11 = vcmp.le.f32.partialorder %v1437_v28, %v1390_v8  ;;  %v375_v61 = vsel %vm374_vm8, 8.0, %v1218_v14 }
  0x56   : > { %v315_v54 = vsub.f32 %v312_v50, %v314_v40  ;;  %v347_v62 = vsub.f32 %v344_v57, %v346_v49  ;;  %v373_v63 = vadd.f32 %v372_v56, %v370_v59  ;;  %vm380_vm12 = vcmp.le.f32.partialorder %v1400_v12, %v1392_v9 }
  0x57   : > { %797 = vperm.xlu0 %1076, %v792_v23   ;;  %804 = vperm.xlu1 %1077, %v799_v24   ;;  %vm383_vm13 = vcmp.le.f32.partialorder %v1409_v13, %v1392_v9  ;;  %v378_v2 = vsel %vm377_vm9, 4.0, %v1218_v14  ;;  %vm386_vm14 = vcmp.le.f32.partialorder %v1421_v19, %v1392_v9  ;;  %vm389_vm15 = vcmp.le.f32.partialorder %v1424_v20, %v1392_v9 }
  0x58   : > { %v318_v60 = vsub.f32 %v315_v54, %v317_v43  ;;  %v350_v3 = vsub.f32 %v347_v62, %v349_v51  ;;  %v355_v4 = vsel %vm354_vm10, 4.0, %v1218_v14  ;;  %vm360_vm0 = vcmp.le.f32.partialorder %v1440_v29, %v1390_v8 }
  0x59   : > { %v376_v6 = vadd.f32 %v375_v61, %v373_v63  ;;  %v358_v7 = vsel %vm357_vm11, 4.0, %v1218_v14  ;;  %v384_v15 = vsel %vm383_vm13, 4.0, %v1218_v14  ;;  %vm392_vm1 = vcmp.le.f32.partialorder %v1432_v25, %v1392_v9 }
  0x5a   : > { %v321_v0 = vsub.f32 %v318_v60, %v320_v44  ;;  %v353_v16 = vsub.f32 %v350_v3, %v352_v58  ;;  %v387_v18 = vsel %vm386_vm14, 4.0, %v1218_v14  ;;  %v390_v21 = vsel %vm389_vm15, 4.0, %v1218_v14 }
  0x5b   : > { %v379_v17 = vsub.f32 %v376_v6, %v378_v2  ;;  %vm403_vm2 = vcmp.le.f32.partialorder %v1388_v5, %v1394_v10  ;;  %vm406_vm3 = vcmp.le.f32.partialorder %v1390_v8, %v1394_v10  ;;  %vm409_vm4 = vcmp.le.f32.partialorder %v1392_v9, %v1394_v10 }
  0x5c   : > { %v324_v22 = vsub.f32 %v321_v0, %v323_v46  ;;  %v356_v23 = vsub.f32 %v353_v16, %v355_v4  ;;  %v404_v26 = vsel %vm403_vm2, 8.0, %v1218_v14  ;;  %v407_v27 = vsel %vm406_vm3, 8.0, %v1218_v14 }
  0x5d   : > { %vm395_vm5 = vcmp.le.f32.partialorder %v1437_v28, %v1392_v9  ;;  %v408_v30 = vadd.f32 %v407_v27, %v404_v26  ;;  %v410_v31 = vsel %vm409_vm4, 8.0, %v1218_v14  ;;  %vm412_vm6 = vcmp.le.f32.partialorder %v1394_v10, %v1394_v10 }
  0x5e   : > { %vm398_vm7 = vcmp.le.f32.partialorder %v1440_v29, %v1392_v9  ;;  %v413_v33 = vsel %vm412_vm6, 8.0, %v1218_v14  ;;  %vm415_vm8 = vcmp.le.f32.partialorder %v1397_v11, %v1394_v10  ;;  %v325_v34 = vand.u32 2147483647, %v324_v22 }
  0x5f   : > { %1079 = vset.pattern.permute.xlu0 %v1217_v1  ;;  %v381_v1 = vsel %vm380_vm12, 4.0, %v1218_v14  ;;  %v359_v35 = vsub.f32 %v356_v23, %v358_v7  ;;  %v411_v36 = vadd.f32 %v410_v31, %v408_v30  ;;  %vm418_vm9 = vcmp.le.f32.partialorder %v1400_v12, %v1394_v10 }
  0x60   : > { %v382_v24 = vsub.f32 %v379_v17, %v381_v1  ;;  %v361_v37 = vsel %vm360_vm0, 4.0, %v1218_v14  ;;  %v416_v39 = vsel %vm415_vm8, 4.0, %v1218_v14  ;;  %vm421_vm10 = vcmp.le.f32.partialorder %v1409_v13, %v1394_v10 }
  0x61   : > { %v393_v40 = vsel %vm392_vm1, 4.0, %v1218_v14  ;;  %v414_v41 = vadd.f32 %v413_v33, %v411_v36  ;;  %vm424_vm11 = vcmp.le.f32.partialorder %v1421_v19, %v1394_v10  ;;  %v396_v43 = vsel %vm395_vm5, 4.0, %v1218_v14 }
  0x62   : > { %v385_v32 = vsub.f32 %v382_v24, %v384_v15  ;;  %v399_v44 = vsel %vm398_vm7, 4.0, %v1218_v14  ;;  %v419_v45 = vsel %vm418_vm9, 4.0, %v1218_v14  ;;  %v326_v46 = vmax.f32 %v325_v34, 0.0 }
  0x63   : > { %v362_v47 = vsub.f32 %v359_v35, %v361_v37  ;;  %v417_v48 = vsub.f32 %v414_v41, %v416_v39  ;;  %v422_v49 = vsel %vm421_vm10, 4.0, %v1218_v14  ;;  %v425_v51 = vsel %vm424_vm11, 4.0, %v1218_v14 }
  0x64   : > { %v388_v38 = vsub.f32 %v385_v32, %v387_v18  ;;  %vm427_vm12 = vcmp.le.f32.partialorder %v1424_v20, %v1394_v10  ;;  %vm430_vm13 = vcmp.le.f32.partialorder %v1432_v25, %v1394_v10  ;;  %vm441_vm14 = vcmp.le.f32.partialorder %v1388_v5, %v1397_v11 }
  0x65   : > { %v420_v52 = vsub.f32 %v417_v48, %v419_v45  ;;  %vm444_vm15 = vcmp.le.f32.partialorder %v1390_v8, %v1397_v11  ;;  %vm447_vm0 = vcmp.le.f32.partialorder %v1392_v9, %v1397_v11  ;;  %v442_v54 = vsel %vm441_vm14, 8.0, %v1218_v14 }
  0x66   : > { %v391_v42 = vsub.f32 %v388_v38, %v390_v21  ;;  %v445_v55 = vsel %vm444_vm15, 8.0, %v1218_v14  ;;  %v448_v56 = vsel %vm447_vm0, 8.0, %v1218_v14  ;;  %vm450_vm1 = vcmp.le.f32.partialorder %v1394_v10, %v1397_v11 }
  0x67   : > { %v423_v57 = vsub.f32 %v420_v52, %v422_v49  ;;  %v446_v58 = vadd.f32 %v445_v55, %v442_v54  ;;  %vm453_vm2 = vcmp.le.f32.partialorder %v1397_v11, %v1397_v11  ;;  %v363_v59 = vand.u32 2147483647, %v362_v47 }
  0x68   : > { %v394_v50 = vsub.f32 %v391_v42, %v393_v40  ;;  %v428_v60 = vsel %vm427_vm12, 4.0, %v1218_v14  ;;  %vm433_vm3 = vcmp.le.f32.partialorder %v1437_v28, %v1394_v10  ;;  %v451_v61 = vsel %vm450_vm1, 8.0, %v1218_v14 }
  0x69   : > { %v426_v63 = vsub.f32 %v423_v57, %v425_v51  ;;  %v449_v0 = vadd.f32 %v448_v56, %v446_v58  ;;  %vm456_vm4 = vcmp.le.f32.partialorder %v1400_v12, %v1397_v11  ;;  %v431_v2 = vsel %vm430_vm13, 4.0, %v1218_v14 }
  0x6a   : > { %v397_v53 = vsub.f32 %v394_v50, %v396_v43  ;;  %v454_v3 = vsel %vm453_vm2, 4.0, %v1218_v14  ;;  %vm459_vm5 = vcmp.le.f32.partialorder %v1409_v13, %v1397_v11  ;;  %vm436_vm6 = vcmp.le.f32.partialorder %v1440_v29, %v1394_v10 }
  0x6b   : > { %v429_v4 = vsub.f32 %v426_v63, %v428_v60  ;;  %v452_v6 = vadd.f32 %v451_v61, %v449_v0  ;;  %v364_v7 = vmax.f32 %v326_v46, %v363_v59  ;;  %v434_v1 = vsel %vm433_vm3, 4.0, %v1218_v14 }
  0x6c   : > { %v400_v62 = vsub.f32 %v397_v53, %v399_v44  ;;  %v457_v15 = vsel %vm456_vm4, 4.0, %v1218_v14  ;;  %vm462_vm7 = vcmp.le.f32.partialorder %v1421_v19, %v1397_v11  ;;  %v460_v21 = vsel %vm459_vm5, 4.0, %v1218_v14 }
  0x6d   : > { %v432_v17 = vsub.f32 %v429_v4, %v431_v2  ;;  %v455_v18 = vsub.f32 %v452_v6, %v454_v3  ;;  %vm465_vm8 = vcmp.le.f32.partialorder %v1424_v20, %v1397_v11  ;;  %vm479_vm9 = vcmp.le.f32.partialorder %v1388_v5, %v1400_v12 }
  0x6e   : > { %v401_v16 = vand.u32 2147483647, %v400_v62  ;;  %vm482_vm10 = vcmp.le.f32.partialorder %v1390_v8, %v1400_v12  ;;  %vm485_vm11 = vcmp.le.f32.partialorder %v1392_v9, %v1400_v12  ;;  %v463_v23 = vsel %vm462_vm7, 4.0, %v1218_v14 }
  0x6f   : > { %v458_v22 = vsub.f32 %v455_v18, %v457_v15  ;;  %v480_v24 = vsel %vm479_vm9, 8.0, %v1218_v14  ;;  %v483_v26 = vsel %vm482_vm10, 8.0, %v1218_v14  ;;  %v486_v30 = vsel %vm485_vm11, 8.0, %v1218_v14 }
  0x70   : > { %v484_v27 = vadd.f32 %v483_v26, %v480_v24  ;;  %vm488_vm12 = vcmp.le.f32.partialorder %v1394_v10, %v1400_v12  ;;  %vm491_vm13 = vcmp.le.f32.partialorder %v1397_v11, %v1400_v12  ;;  %v435_v31 = vsub.f32 %v432_v17, %v434_v1 }
  0x71   : > { %v461_v32 = vsub.f32 %v458_v22, %v460_v21  ;;  %vm468_vm14 = vcmp.le.f32.partialorder %v1432_v25, %v1397_v11  ;;  %v489_v33 = vsel %vm488_vm12, 8.0, %v1218_v14  ;;  %v437_v34 = vsel %vm436_vm6, 4.0, %v1218_v14 }
  0x72   : > { %v466_v35 = vsel %vm465_vm8, 4.0, %v1218_v14  ;;  %v487_v36 = vadd.f32 %v486_v30, %v484_v27  ;;  %vm494_vm15 = vcmp.le.f32.partialorder %v1400_v12, %v1400_v12  ;;  %vm471_vm0 = vcmp.le.f32.partialorder %v1437_v28, %v1397_v11 }
  0x73   : > { %v464_v37 = vsub.f32 %v461_v32, %v463_v23  ;;  %v492_v38 = vsel %vm491_vm13, 4.0, %v1218_v14  ;;  %v402_v39 = vmax.f32 %v364_v7, %v401_v16  ;;  %v469_v40 = vsel %vm468_vm14, 4.0, %v1218_v14 }
  0x74   : > { %v490_v41 = vadd.f32 %v489_v33, %v487_v36  ;;  %vm497_vm1 = vcmp.le.f32.partialorder %v1409_v13, %v1400_v12  ;;  %v438_v42 = vsub.f32 %v435_v31, %v437_v34  ;;  %vm474_vm2 = vcmp.le.f32.partialorder %v1440_v29, %v1397_v11 }
  0x75   : > { %v467_v43 = vsub.f32 %v464_v37, %v466_v35  ;;  %v495_v44 = vsel %vm494_vm15, 4.0, %v1218_v14  ;;  %v472_v45 = vsel %vm471_vm0, 4.0, %v1218_v14  ;;  %vm500_vm3 = vcmp.le.f32.partialorder %v1421_v19, %v1400_v12 }
  0x76   : > { %v493_v46 = vsub.f32 %v490_v41, %v492_v38  ;;  %vm517_vm4 = vcmp.le.f32.partialorder %v1388_v5, %v1409_v13  ;;  %v498_v48 = vsel %vm497_vm1, 4.0, %v1218_v14  ;;  %vm503_vm5 = vcmp.le.f32.partialorder %v1424_v20, %v1400_v12 }
  0x77   : > { %v470_v47 = vsub.f32 %v467_v43, %v469_v40  ;;  %v518_v49 = vsel %vm517_vm4, 8.0, %v1218_v14  ;;  %vm520_vm6 = vcmp.le.f32.partialorder %v1390_v8, %v1409_v13  ;;  %vm523_vm7 = vcmp.le.f32.partialorder %v1392_v9, %v1409_v13 }
  0x78   : > { %v496_v50 = vsub.f32 %v493_v46, %v495_v44  ;;  %vm526_vm8 = vcmp.le.f32.partialorder %v1394_v10, %v1409_v13  ;;  %v439_v51 = vand.u32 2147483647, %v438_v42  ;;  %v501_v52 = vsel %vm500_vm3, 4.0, %v1218_v14 }
  0x79   : > { %v521_v53 = vsel %vm520_vm6, 8.0, %v1218_v14  ;;  %v524_v54 = vsel %vm523_vm7, 8.0, %v1218_v14  ;;  %vm506_vm9 = vcmp.le.f32.partialorder %v1432_v25, %v1400_v12  ;;  %vm529_vm10 = vcmp.le.f32.partialorder %v1397_v11, %v1409_v13 }
  0x7a   : > { %v499_v55 = vsub.f32 %v496_v50, %v498_v48  ;;  %v522_v56 = vadd.f32 %v521_v53, %v518_v49  ;;  %v473_v57 = vsub.f32 %v470_v47, %v472_v45  ;;  %v475_v58 = vsel %vm474_vm2, 4.0, %v1218_v14 }
  0x7b   : > { %v504_v59 = vsel %vm503_vm5, 4.0, %v1218_v14  ;;  %v527_v60 = vsel %vm526_vm8, 8.0, %v1218_v14  ;;  %vm509_vm11 = vcmp.le.f32.partialorder %v1437_v28, %v1400_v12  ;;  %vm532_vm12 = vcmp.le.f32.partialorder %v1400_v12, %v1409_v13 }
  0x7c   : > { %v502_v61 = vsub.f32 %v499_v55, %v501_v52  ;;  %v525_v62 = vadd.f32 %v524_v54, %v522_v56  ;;  %v507_v63 = vsel %vm506_vm9, 4.0, %v1218_v14  ;;  %v530_v0 = vsel %vm529_vm10, 4.0, %v1218_v14 }
  0x7d   : > { %vm535_vm13 = vcmp.le.f32.partialorder %v1409_v13, %v1409_v13  ;;  %v440_v2 = vmax.f32 %v402_v39, %v439_v51  ;;  %vm512_vm14 = vcmp.le.f32.partialorder %v1440_v29, %v1400_v12  ;;  %v476_v6 = vsub.f32 %v473_v57, %v475_v58 }
  0x7e   : > { %v505_v3 = vsub.f32 %v502_v61, %v504_v59  ;;  %v528_v4 = vadd.f32 %v527_v60, %v525_v62  ;;  %v510_v7 = vsel %vm509_vm11, 4.0, %v1218_v14  ;;  %v533_v1 = vsel %vm532_vm12, 4.0, %v1218_v14 }
  0x7f   : > { %vm555_vm15 = vcmp.le.f32.partialorder %v1388_v5, %v1421_v19  ;;  %v536_v17 = vsel %vm535_vm13, 4.0, %v1218_v14  ;;  %vm538_vm0 = vcmp.le.f32.partialorder %v1421_v19, %v1409_v13  ;;  %vm558_vm1 = vcmp.le.f32.partialorder %v1390_v8, %v1421_v19 }
  0x80   : > { %v508_v15 = vsub.f32 %v505_v3, %v507_v63  ;;  %v531_v16 = vsub.f32 %v528_v4, %v530_v0  ;;  %v556_v18 = vsel %vm555_vm15, 8.0, %v1218_v14  ;;  %vm561_vm2 = vcmp.le.f32.partialorder %v1392_v9, %v1421_v19 }
  0x81   : > { %vm564_vm3 = vcmp.le.f32.partialorder %v1394_v10, %v1421_v19  ;;  %vm541_vm4 = vcmp.le.f32.partialorder %v1424_v20, %v1409_v13  ;;  %v559_v22 = vsel %vm558_vm1, 8.0, %v1218_v14  ;;  %v562_v23 = vsel %vm561_vm2, 8.0, %v1218_v14 }
  0x82   : > { %v534_v21 = vsub.f32 %v531_v16, %v533_v1  ;;  %v477_v24 = vand.u32 2147483647, %v476_v6  ;;  %v539_v26 = vsel %vm538_vm0, 4.0, %v1218_v14  ;;  %v560_v27 = vadd.f32 %v559_v22, %v556_v18 }
  0x83   : > { %vm567_vm5 = vcmp.le.f32.partialorder %v1397_v11, %v1421_v19  ;;  %v511_v30 = vsub.f32 %v508_v15, %v510_v7  ;;  %vm544_vm6 = vcmp.le.f32.partialorder %v1432_v25, %v1409_v13  ;;  %v565_v32 = vsel %vm564_vm3, 8.0, %v1218_v14 }
  0x84   : > { %v537_v31 = vsub.f32 %v534_v21, %v536_v17  ;;  %v513_v33 = vsel %vm512_vm14, 4.0, %v1218_v14  ;;  %v542_v34 = vsel %vm541_vm4, 4.0, %v1218_v14  ;;  %v563_v35 = vadd.f32 %v562_v23, %v560_v27 }
  0x85   : > { %vm570_vm7 = vcmp.le.f32.partialorder %v1400_v12, %v1421_v19  ;;  %v568_v37 = vsel %vm567_vm5, 4.0, %v1218_v14  ;;  %v478_v38 = vmax.f32 %v440_v2, %v477_v24  ;;  %v545_v39 = vsel %vm544_vm6, 4.0, %v1218_v14 }
  0x86   : > { %v540_v36 = vsub.f32 %v537_v31, %v539_v26  ;;  %vm547_vm8 = vcmp.le.f32.partialorder %v1437_v28, %v1409_v13  ;;  %v566_v40 = vadd.f32 %v565_v32, %v563_v35  ;;  %v514_v41 = vsub.f32 %v511_v30, %v513_v33 }
  0x87   : > { %vm550_vm9 = vcmp.le.f32.partialorder %v1440_v29, %v1409_v13  ;;  %v571_v43 = vsel %vm570_vm7, 4.0, %v1218_v14  ;;  %vm573_vm10 = vcmp.le.f32.partialorder %v1409_v13, %v1421_v19  ;;  %vm593_vm11 = vcmp.le.f32.partialorder %v1388_v5, %v1424_v20 }
  0x88   : > { %v543_v42 = vsub.f32 %v540_v36, %v542_v34  ;;  %v569_v44 = vsub.f32 %v566_v40, %v568_v37  ;;  %vm596_vm12 = vcmp.le.f32.partialorder %v1390_v8, %v1424_v20  ;;  %v548_v46 = vsel %vm547_vm8, 4.0, %v1218_v14 }
  0x89   : > { %v594_v47 = vsel %vm593_vm11, 8.0, %v1218_v14  ;;  %v597_v48 = vsel %vm596_vm12, 8.0, %v1218_v14  ;;  %vm599_vm13 = vcmp.le.f32.partialorder %v1392_v9, %v1424_v20  ;;  %vm602_vm14 = vcmp.le.f32.partialorder %v1394_v10, %v1424_v20 }
  0x8a   : > { %v546_v45 = vsub.f32 %v543_v42, %v545_v39  ;;  %v572_v49 = vsub.f32 %v569_v44, %v571_v43  ;;  %v598_v50 = vadd.f32 %v597_v48, %v594_v47  ;;  %v574_v51 = vsel %vm573_vm10, 4.0, %v1218_v14 }
  0x8b   : > { %v600_v52 = vsel %vm599_vm13, 8.0, %v1218_v14  ;;  %v603_v53 = vsel %vm602_vm14, 8.0, %v1218_v14  ;;  %vm605_vm15 = vcmp.le.f32.partialorder %v1397_v11, %v1424_v20  ;;  %v515_v54 = vand.u32 2147483647, %v514_v41 }
  0x8c   : > { %vm576_vm0 = vcmp.le.f32.partialorder %v1421_v19, %v1421_v19  ;;  %v601_v55 = vadd.f32 %v600_v52, %v598_v50  ;;  %vm608_vm1 = vcmp.le.f32.partialorder %v1400_v12, %v1424_v20  ;;  %v549_v56 = vsub.f32 %v546_v45, %v548_v46 }
  0x8d   : > { %vm579_vm2 = vcmp.le.f32.partialorder %v1424_v20, %v1421_v19  ;;  %v606_v57 = vsel %vm605_vm15, 4.0, %v1218_v14  ;;  %v551_v58 = vsel %vm550_vm9, 4.0, %v1218_v14  ;;  %v575_v59 = vsub.f32 %v572_v49, %v574_v51 }
  0x8e   : > { %v604_v60 = vadd.f32 %v603_v53, %v601_v55  ;;  %vm611_vm3 = vcmp.le.f32.partialorder %v1409_v13, %v1424_v20  ;;  %v577_v61 = vsel %vm576_vm0, 4.0, %v1218_v14  ;;  %vm582_vm4 = vcmp.le.f32.partialorder %v1432_v25, %v1421_v19 }
  0x8f   : > { %v609_v62 = vsel %vm608_vm1, 4.0, %v1218_v14  ;;  %v516_v63 = vmax.f32 %v478_v38, %v515_v54  ;;  %v580_v0 = vsel %vm579_vm2, 4.0, %v1218_v14  ;;  %vm585_vm5 = vcmp.le.f32.partialorder %v1437_v28, %v1421_v19 }
  0x90   : > { %v607_v2 = vsub.f32 %v604_v60, %v606_v57  ;;  %v552_v3 = vsub.f32 %v549_v56, %v551_v58  ;;  %v612_v4 = vsel %vm611_vm3, 4.0, %v1218_v14  ;;  %vm614_vm6 = vcmp.le.f32.partialorder %v1421_v19, %v1424_v20 }
  0x91   : > { %vm631_vm7 = vcmp.le.f32.partialorder %v1388_v5, %v1432_v25  ;;  %v578_v6 = vsub.f32 %v575_v59, %v577_v61  ;;  %v583_v7 = vsel %vm582_vm4, 4.0, %v1218_v14  ;;  %vm588_vm8 = vcmp.le.f32.partialorder %v1440_v29, %v1421_v19 }
  0x92   : > { %v610_v1 = vsub.f32 %v607_v2, %v609_v62  ;;  %v632_v15 = vsel %vm631_vm7, 8.0, %v1218_v14  ;;  %vm634_vm9 = vcmp.le.f32.partialorder %v1390_v8, %v1432_v25  ;;  %vm637_vm10 = vcmp.le.f32.partialorder %v1392_v9, %v1432_v25 }
  0x93   : > { %vm640_vm11 = vcmp.le.f32.partialorder %v1394_v10, %v1432_v25  ;;  %v615_v17 = vsel %vm614_vm6, 4.0, %v1218_v14  ;;  %v635_v18 = vsel %vm634_vm9, 8.0, %v1218_v14  ;;  %v638_v21 = vsel %vm637_vm10, 8.0, %v1218_v14 }
  0x94   : > { %v613_v16 = vsub.f32 %v610_v1, %v612_v4  ;;  %v553_v22 = vand.u32 2147483647, %v552_v3  ;;  %vm617_vm12 = vcmp.le.f32.partialorder %v1424_v20, %v1424_v20  ;;  %v636_v23 = vadd.f32 %v635_v18, %v632_v15 }
  0x95   : > { %vm643_vm13 = vcmp.le.f32.partialorder %v1397_v11, %v1432_v25  ;;  %v581_v24 = vsub.f32 %v578_v6, %v580_v0  ;;  %v586_v26 = vsel %vm585_vm5, 4.0, %v1218_v14  ;;  %vm620_vm14 = vcmp.le.f32.partialorder %v1432_v25, %v1424_v20 }
  0x96   : > { %v641_v27 = vsel %vm640_vm11, 8.0, %v1218_v14  ;;  %v616_v30 = vsub.f32 %v613_v16, %v615_v17  ;;  %v639_v31 = vadd.f32 %v638_v21, %v636_v23  ;;  %vm646_vm15 = vcmp.le.f32.partialorder %v1400_v12, %v1432_v25 }
  0x97   : > { %vm649_vm0 = vcmp.le.f32.partialorder %v1409_v13, %v1432_v25  ;;  %v589_v32 = vsel %vm588_vm8, 4.0, %v1218_v14  ;;  %v618_v33 = vsel %vm617_vm12, 4.0, %v1218_v14  ;;  %vm623_vm1 = vcmp.le.f32.partialorder %v1437_v28, %v1424_v20 }
  0x98   : > { %v644_v34 = vsel %vm643_vm13, 4.0, %v1218_v14  ;;  %v1813_v35 = vmax.f32 %v516_v63, %v553_v22  ;;  %v621_v36 = vsel %vm620_vm14, 4.0, %v1218_v14  ;;  %vm626_vm2 = vcmp.le.f32.partialorder %v1440_v29, %v1424_v20 }
  0x99   : > { %v642_v37 = vadd.f32 %v641_v27, %v639_v31  ;;  %v584_v38 = vsub.f32 %v581_v24, %v583_v7  ;;  %v647_v39 = vsel %vm646_vm15, 4.0, %v1218_v14  ;;  %v650_v40 = vsel %vm649_vm0, 4.0, %v1218_v14 }
  0x9a   : > { %vm652_vm3 = vcmp.le.f32.partialorder %v1421_v19, %v1432_v25  ;;  %v619_v41 = vsub.f32 %v616_v30, %v618_v33  ;;  %vm669_vm4 = vcmp.le.f32.partialorder %v1388_v5, %v1437_v28  ;;  %vm672_vm5 = vcmp.le.f32.partialorder %v1390_v8, %v1437_v28 }
  0x9b   : > { %v645_v42 = vsub.f32 %v642_v37, %v644_v34  ;;  %vm655_vm6 = vcmp.le.f32.partialorder %v1424_v20, %v1432_v25  ;;  %v670_v43 = vsel %vm669_vm4, 8.0, %v1218_v14  ;;  %v673_v44 = vsel %vm672_vm5, 8.0, %v1218_v14 }
  0x9c   : > { %vm675_vm7 = vcmp.le.f32.partialorder %v1392_v9, %v1437_v28  ;;  %v674_v46 = vadd.f32 %v673_v44, %v670_v43  ;;  %vm678_vm8 = vcmp.le.f32.partialorder %v1394_v10, %v1437_v28  ;;  %v587_v48 = vsub.f32 %v584_v38, %v586_v26 }
  0x9d   : > { %v648_v45 = vsub.f32 %v645_v42, %v647_v39  ;;  %v676_v47 = vsel %vm675_vm7, 8.0, %v1218_v14  ;;  %v653_v49 = vsel %vm652_vm3, 4.0, %v1218_v14  ;;  %v679_v50 = vsel %vm678_vm8, 8.0, %v1218_v14 }
  0x9e   : > { %vm681_vm9 = vcmp.le.f32.partialorder %v1397_v11, %v1437_v28  ;;  %v622_v51 = vsub.f32 %v619_v41, %v621_v36  ;;  %v677_v53 = vadd.f32 %v676_v47, %v674_v46  ;;  %vm684_vm10 = vcmp.le.f32.partialorder %v1400_v12, %v1437_v28 }
  0x9f   : > { %v651_v52 = vsub.f32 %v648_v45, %v650_v40  ;;  %v624_v54 = vsel %vm623_vm1, 4.0, %v1218_v14  ;;  %v656_v55 = vsel %vm655_vm6, 4.0, %v1218_v14  ;;  %vm658_vm11 = vcmp.le.f32.partialorder %v1432_v25, %v1432_v25 }
  0xa0   : > { %v682_v56 = vsel %vm681_vm9, 4.0, %v1218_v14  ;;  %v627_v57 = vsel %vm626_vm2, 4.0, %v1218_v14  ;;  %v680_v59 = vadd.f32 %v679_v50, %v677_v53  ;;  %vm687_vm12 = vcmp.le.f32.partialorder %v1409_v13, %v1437_v28 }
  0xa1   : > { %v654_v58 = vsub.f32 %v651_v52, %v653_v49  ;;  %v590_v60 = vsub.f32 %v587_v48, %v589_v32  ;;  %vm661_vm13 = vcmp.le.f32.partialorder %v1437_v28, %v1432_v25  ;;  %v685_v61 = vsel %vm684_vm10, 4.0, %v1218_v14 }
  0xa2   : > { %vm690_vm14 = vcmp.le.f32.partialorder %v1421_v19, %v1437_v28  ;;  %v625_v62 = vsub.f32 %v622_v51, %v624_v54  ;;  %v659_v0 = vsel %vm658_vm11, 4.0, %v1218_v14  ;;  %v683_v2 = vsub.f32 %v680_v59, %v682_v56 }
  0xa3   : > { %v657_v63 = vsub.f32 %v654_v58, %v656_v55  ;;  %v688_v3 = vsel %vm687_vm12, 4.0, %v1218_v14  ;;  %vm707_vm15 = vcmp.le.f32.partialorder %v1388_v5, %v1440_v29  ;;  %vm710_vm0 = vcmp.le.f32.partialorder %v1390_v8, %v1440_v29 }
  0xa4   : > { %vm713_vm1 = vcmp.le.f32.partialorder %v1392_v9, %v1440_v29  ;;  %v686_v4 = vsub.f32 %v683_v2, %v685_v61  ;;  %v691_v6 = vsel %vm690_vm14, 4.0, %v1218_v14  ;;  %vm693_vm2 = vcmp.le.f32.partialorder %v1424_v20, %v1437_v28 }
  0xa5   : > { %v708_v7 = vsel %vm707_vm15, 8.0, %v1218_v14  ;;  %vm696_vm3 = vcmp.le.f32.partialorder %v1432_v25, %v1437_v28  ;;  %v711_v1 = vsel %vm710_vm0, 8.0, %v1218_v14  ;;  %v714_v5 = vsel %vm713_vm1, 8.0, %v1218_v14 }
  0xa6   : > { %vm716_vm4 = vcmp.le.f32.partialorder %v1394_v10, %v1440_v29  ;;  %v660_v8 = vsub.f32 %v657_v63, %v659_v0  ;;  %v689_v9 = vsub.f32 %v686_v4, %v688_v3  ;;  %v712_v15 = vadd.f32 %v711_v1, %v708_v7 }
  0xa7   : > { %vm719_vm5 = vcmp.le.f32.partialorder %v1397_v11, %v1440_v29  ;;  %v662_v16 = vsel %vm661_vm13, 4.0, %v1218_v14  ;;  %vm664_vm6 = vcmp.le.f32.partialorder %v1440_v29, %v1432_v25  ;;  %v694_v17 = vsel %vm693_vm2, 4.0, %v1218_v14 }
  0xa8   : > { %v717_v18 = vsel %vm716_vm4, 8.0, %v1218_v14  ;;  %v692_v21 = vsub.f32 %v689_v9, %v691_v6  ;;  %vm699_vm7 = vcmp.le.f32.partialorder %v1437_v28, %v1437_v28  ;;  %v715_v10 = vadd.f32 %v714_v5, %v712_v15 }
  0xa9   : > { %vm722_vm8 = vcmp.le.f32.partialorder %v1400_v12, %v1440_v29  ;;  %v591_v11 = vand.u32 2147483647, %v590_v60  ;;  %v628_v22 = vsub.f32 %v625_v62, %v627_v57  ;;  %v697_v23 = vsel %vm696_vm3, 4.0, %v1218_v14 }
  0xaa   : > { %v720_v24 = vsel %vm719_vm5, 4.0, %v1218_v14  ;;  %v663_v26 = vsub.f32 %v660_v8, %v662_v16  ;;  %v695_v27 = vsub.f32 %v692_v21, %v694_v17  ;;  %v718_v30 = vadd.f32 %v717_v18, %v715_v10 }
  0xab   : > { %vm725_vm9 = vcmp.le.f32.partialorder %v1409_v13, %v1440_v29  ;;  %v665_v31 = vsel %vm664_vm6, 4.0, %v1218_v14  ;;  %v700_v32 = vsel %vm699_vm7, 4.0, %v1218_v14  ;;  %v723_v12 = vsel %vm722_vm8, 4.0, %v1218_v14 }
  0xac   : > { %v698_v33 = vsub.f32 %v695_v27, %v697_v23  ;;  %vm702_vm10 = vcmp.le.f32.partialorder %v1440_v29, %v1437_v28  ;;  %v721_v34 = vsub.f32 %v718_v30, %v720_v24  ;;  %vm728_vm11 = vcmp.le.f32.partialorder %v1421_v19, %v1440_v29 }
  0xad   : > { %v592_v36 = vmax.f32 %v1813_v35, %v591_v11  ;;  %v629_v37 = vand.u32 2147483647, %v628_v22  ;;  %v726_v38 = vsel %vm725_vm9, 4.0, %v1218_v14  ;;  %v666_v13 = vsub.f32 %v663_v26, %v665_v31 }
  0xae   : > { %v701_v39 = vsub.f32 %v698_v33, %v700_v32  ;;  %v724_v40 = vsub.f32 %v721_v34, %v723_v12  ;;  %vm731_vm12 = vcmp.le.f32.partialorder %v1424_v20, %v1440_v29  ;;  %v703_v41 = vsel %vm702_vm10, 4.0, %v1218_v14 }
  0xaf   : > { %v729_v42 = vsel %vm728_vm11, 4.0, %v1218_v14  ;;  %vm734_vm13 = vcmp.le.f32.partialorder %v1432_v25, %v1440_v29  ;;  %v630_v19 = vmax.f32 %v592_v36, %v629_v37  ;;  %v732_v35 = vsel %vm731_vm12, 4.0, %v1218_v14 }
  0xb0   : > { %v727_v43 = vsub.f32 %v724_v40, %v726_v38  ;;  %v667_v44 = vand.u32 2147483647, %v666_v13  ;;  %v704_v45 = vsub.f32 %v701_v39, %v703_v41  ;;  %vm737_vm14 = vcmp.le.f32.partialorder %v1437_v28, %v1440_v29 }
  0xb1   : > { %v735_v47 = vsel %vm734_vm13, 4.0, %v1218_v14  ;;  %vm740_vm15 = vcmp.le.f32.partialorder %v1440_v29, %v1440_v29  ;;  %v738_v48 = vsel %vm737_vm14, 4.0, %v1218_v14  ;;  %vm866_vm5 = vcmask 1041409  }
  0xb2   : > { %v730_v46 = vsub.f32 %v727_v43, %v729_v42  ;;  %v668_v49 = vmax.f32 %v630_v19, %v667_v44  ;;  %v705_v50 = vand.u32 2147483647, %v704_v45  ;;  %v741_v51 = vsel %vm740_vm15, 4.0, %v1218_v14 }
  0xb3   : > { %vm869_vm6 = vcmask 1042434   ;;  %vm872_vm7 = vcmask 1043459  }
  0xb4   : > { %v733_v20 = vsub.f32 %v730_v46, %v732_v35  ;;  %v706_v53 = vmax.f32 %v668_v49, %v705_v50 }
  0xb6   : > { %v736_v25 = vsub.f32 %v733_v20, %v735_v47  ;;  %v837_v47 = vpop.permute.xlu2 %836 }
  0xb8   : > { %v739_v52 = vsub.f32 %v736_v25, %v738_v48  ;;  %v838_v25 = vrot.slane %v837_v47, 1 }
  0xba   : > { %v742_v54 = vsub.f32 %v739_v52, %v741_v51  ;;  %v839_v51 = vrot.slane %v837_v47, 2  ;;  %v840_v52 = vrot.slane %v837_v47, 3 }
  0xbc   : > { %v743_v55 = vand.u32 2147483647, %v742_v54 }
  0xbe   : > { %v744_v56 = vmax.f32 %v706_v53, %v743_v55 }
  0xc0   : > { %v745_v57 = vmul.f32 0.03125, %v744_v56 }
  0xc1   : > { %v791_v10 = vpop.permute.xlu0 %790  ;;  %v784_v11 = vpop.permute.xlu1 %783 }
  0xc2   : > { %v746_v28 = vmul.f32 2.6666667, %v745_v57  ;;  %vm774_vm0 = vcmp.le.f32.partialorder %v745_v57, 0.0 }
  0xc4   : > { %v747_v58 = vmul.f32 %v746_v28, %v745_v57 }
  0xc6   : > { %v748_v59 = vmul.f32 -2.0, %v747_v58 }
  0xc8   : > { %v749_v60 = vmul.f32 1.442695, %v748_v59 }
  0xc9   : > { %v798_v31 = vpop.permute.xlu0 %797  ;;  %v805_v32 = vpop.permute.xlu1 %804 }
  0xca   : > { %1080 = vpow2.f32 %v749_v60 }
  0xd0   : > { %v1081_v61 = vpop.eup %1080 }
  0xd1   : > { %v751_v29 = vmul.f32 %v1081_v61, %v1081_v61 }
  0xd3   : > { %v752_v62 = vmul.f32 %v1081_v61, %v751_v29 }
  0xd5   : > { %v753_v63 = vmul.f32 %v1081_v61, %v752_v62  ;;  %v754_v0 = vmul.f32 %v752_v62, %v751_v29 }
  0xd7   : > { %v755_v2 = vsub.f32 %v1081_v61, %v753_v63  ;;  %v756_v3 = vmul.f32 %v754_v0, %v753_v63  ;;  %v757_v4 = vmul.f32 %v754_v0, %v751_v29 }
  0xd9   : > { %v758_v14 = vadd.f32 %v756_v3, %v755_v2  ;;  %v759_v6 = vmul.f32 %v757_v4, %v756_v3  ;;  %v760_v7 = vmul.f32 %v757_v4, %v751_v29 }
  0xdb   : > { %v761_v1 = vsub.f32 %v758_v14, %v759_v6  ;;  %v762_v5 = vmul.f32 %v760_v7, %v759_v6  ;;  %v763_v8 = vmul.f32 %v760_v7, %v751_v29 }
  0xdd   : > { %v764_v9 = vadd.f32 %v762_v5, %v761_v1  ;;  %v765_v15 = vmul.f32 %v763_v8, %v762_v5  ;;  %v766_v16 = vmul.f32 %v763_v8, %v751_v29 }
  0xdf   : > { %v767_v17 = vsub.f32 %v764_v9, %v765_v15  ;;  %v768_v18 = vmul.f32 %v766_v16, %v765_v15  ;;  %v769_v21 = vmul.f32 %v766_v16, %v751_v29 }
  0xe1   : > { %v770_v22 = vadd.f32 %v768_v18, %v767_v17  ;;  %v771_v23 = vmul.f32 %v769_v21, %v768_v18 }
  0xe3   : > { %v772_v24 = vsub.f32 %v770_v22, %v771_v23 }
  0xe5   : > { %v773_v26 = vmul.f32 2.0, %v772_v24 }
  0xe7   : > { %v775_v27 = vmax.f32 %v773_v26, 0.0 }
  0xe9   : > { %v776_v30 = vmin.f32 %v775_v27, 1.0 }
  0xeb   : > { %v777_v12 = vsel %vm774_vm0, 1.0, %v776_v30 }
  0xec   : > { %v807_v33 = vmul.f32 %v791_v10, %v777_v12  ;;  %v806_v34 = vmul.f32 %v784_v11, %v777_v12  ;;  %v808_v36 = vmul.f32 %v798_v31, %v777_v12  ;;  %v809_v37 = vmul.f32 %v805_v32, %v777_v12 }
  0xee   : > { %v816_v38 = vrot.slane %v807_v33, 4  ;;  %v810_v13 = vrot.slane %v806_v34, 4  ;;  %v822_v39 = vrot.slane %v808_v36, 4  ;;  %v828_v40 = vrot.slane %v809_v37, 4 }
  0xf0   : > { %v817_v41 = vadd.f32 %v816_v38, %v807_v33  ;;  %v811_v42 = vadd.f32 %v810_v13, %v806_v34  ;;  %v823_v43 = vadd.f32 %v822_v39, %v808_v36  ;;  %v829_v19 = vadd.f32 %v828_v40, %v809_v37 }
  0xf2   : > { %v818_v35 = vrot.slane %v817_v41, 2  ;;  %v812_v44 = vrot.slane %v811_v42, 2  ;;  %v824_v45 = vrot.slane %v823_v43, 2  ;;  %v830_v46 = vrot.slane %v829_v19, 2 }
  0xf4   : > { %v819_v20 = vadd.f32 %v818_v35, %v817_v41  ;;  %v813_v48 = vadd.f32 %v812_v44, %v811_v42  ;;  %v825_v49 = vadd.f32 %v824_v45, %v823_v43  ;;  %v831_v50 = vadd.f32 %v830_v46, %v829_v19 }
  0xf6   : > { %v820_v53 = vrot.slane %v819_v20, 1  ;;  %v814_v54 = vrot.slane %v813_v48, 1  ;;  %v826_v55 = vrot.slane %v825_v49, 1  ;;  %v832_v56 = vrot.slane %v831_v50, 1 }
  0xf8   : > { %v821_v57 = vadd.f32 %v820_v53, %v819_v20  ;;  %v827_v28 = vadd.f32 %v826_v55, %v825_v49  ;;  %v833_v58 = vadd.f32 %v832_v56, %v831_v50  ;;  %v815_v59 = vadd.f32 %v814_v54, %v813_v48 }
  0xfa   : > { %v845_v60 = vadd.f32 %v837_v47, %v815_v59  ;;  %v846_v61 = vadd.f32 %v838_v25, %v821_v57  ;;  %v847_v29 = vadd.f32 %v839_v51, %v827_v28  ;;  %v848_v62 = vadd.f32 %v840_v52, %v833_v58 }
  0xfc   : > { %vm850_vm1 = vcmp.ge.f32.partialorder %v846_v61, 0.0  ;;  %vm851_vm2 = vcmp.ge.f32.partialorder %v847_v29, 0.0  ;;  %vm852_vm3 = vcmp.ge.f32.partialorder %v848_v62, 0.0  ;;  %v853_v63 = vmul.f32 0.01, %v845_v60 }
  0xfd   : > { %v854_v0 = vmul.f32 0.01, %v846_v61  ;;  %v855_v2 = vmul.f32 0.01, %v847_v29  ;;  %vm849_vm4 = vcmp.ge.f32.partialorder %v845_v60, 0.0 }
  0xfe   : > { %v856_v3 = vmul.f32 0.01, %v848_v62  ;;  %v857_v5 = vsel %vm849_vm4, %v845_v60, %v853_v63 }
  0xff   : > { %v858_v4 = vsel %vm850_vm1, %v846_v61, %v854_v0  ;;  %v859_v14 = vsel %vm851_vm2, %v847_v29, %v855_v2 }
 0x100   : > { %v860_v6 = vsel %vm852_vm3, %v848_v62, %v856_v3  ;;  %v865_v7 = vrot.slane %v858_v4, 7  ;;  %v868_v1 = vrot.slane %v859_v14, 6 }
 0x101   : > { %v871_v8 = vrot.slane %v860_v6, 5 }
 0x102   : > { %v867_v9 = vsel %vm866_vm5, %v865_v7, %v857_v5 }
 0x103   : > { %v870_v15 = vsel %vm869_vm6, %v868_v1, %v867_v9 }
 0x104   : > { %v873_v16 = vsel %vm872_vm7, %v871_v8, %v870_v15 }
 0x105   : > { %875 = vst [vmem:[%s257_s19] sm:$0xf] %v873_v16 }
 0x106   : > { %1169 = shalt.err (!%p1166_p7)
}
 0x107   : > { %1024 = dma.vmem_to_hbm [thread:$0]  (%p1294_p11), %s890_s11, 64, %s892_s13, %s877_s20  }
 0x108 PF: > { %s903_s29 = sand.u32 1, %s1200_s15   ;;  %p1034_p0 = pnand %p997_p9, %p1298_p12 }
 0x109   : > { %s904_s7 = scalar_lea.sflag [#allocation4], %s903_s29 }
 0x10a   : > { %p1035_p8 = pneg %p1034_p0 }
 0x10c   : > { %1195 = dma.done.wait (%p1035_p8), %s904_s7, 64  }
 0x10d   : > { %1197 = vsyncadd (%p1035_p8), %s904_s7, 4294967232  ;;  %s1975_s8 = sld [smem:[#allocation11_spill]]  ;;  %p20_p10 = scmp.ge.s32.totalorder %s1269_s21, 4  }
 0x10e   : > { %s1976_s17 = sld [smem:[#allocation12_spill]]  ;;  %s1977_s15 = smov %s1204_s16 }
 0x10f   : > { %s1979_s18 = smov %s1269_s21  ;;  %22 = sbr.rel (!%p20_p10) target bundleno = 9 (0x9), region = 104 }
 0x113   : > { %s1978_s16 = smov %s1975_s8 }
 0x114   :  { %910 = vsyncpa [#allocation3], 1 }
 0x115   :  { %912 = vsyncpa [#allocation3 + $0x1], 1 }
 0x116   :  { %913 = vsyncpa [#allocation6], 1 }
 0x117   :  { %915 = vsyncpa [#allocation6 + $0x1], 1 }
 0x118   :  { %916 = vsyncpa [#allocation4], 1 }
 0x119   :  { %918 = vsyncpa [#allocation4 + $0x1], 1 }

</bundles_post_ra>
